<compile_context>
chip_gen: v7x
topology: tpu7x:2x2x1
jax: 0.10.0
libtpu: 0.0.40
codegen_flags: <defaults>
</compile_context>

<pallas_src>
import functools

import jax
import jax.numpy as jnp
from jax.experimental import pallas as pl
from jax.experimental.pallas import tpu as pltpu


# ------------------------------ fused kernel ---------------------------------

def _tcn_kernel(x_ref, pw_ref, pb_ref, s1_ref, t1_ref, s2_ref, t2_ref,
                ow_ref, ob_ref, *rest, B, T, shifts_per_block):
    """Whole TCN forward, single grid-less invocation, everything VMEM-resident.

    x_ref : (B*T, Cin) f32                 flattened input (time fastest)
    pw_ref: (Cin, C) bf16, pb_ref: (1, C) f32          1x1 input projection
    s*/t* : (S, 1, C) f32                  folded BN scale / shift (+conv bias)
    ow_ref: (C, O) bf16, ob_ref: (1, O) f32            linear head
    rest  : w1_0..w1_{S-1}, w2_0..w2_{S-1} bf16 (n_live*C, C) packed conv
            weights, then out_ref (B, O).
    """
    S = len(shifts_per_block)
    w1_refs = rest[:S]
    w2_refs = rest[S:2 * S]
    out_ref = rest[2 * S]

    BT = B * T
    C = pb_ref.shape[-1]

    # Causal / cross-batch masks, built ONCE per distinct positive shift
    # (JAX does not CSE the broadcast+compare).
    t_in_batch = jax.lax.broadcasted_iota(jnp.int32, (BT, C), 0) % T
    masks = {s: t_in_batch >= s
             for s in sorted({s for sh in shifts_per_block for s in sh if s > 0})}

    def conv_bn_relu(h, w_ref, scale, shift, shifts):
        """Causal dilated conv (all live taps as ONE matmul) -> BN -> ReLU."""
        pieces = []
        for s in shifts:
            if s == 0:
                pieces.append(h)
            else:
                # pltpu.roll == jnp.roll: row i <- h[i-s]; the mask zeroes the
                # causal pad region and rows whose source crosses a batch
                # boundary (wrapped rows are never read through the mask).
                pieces.append(jnp.where(masks[s],
                                        pltpu.roll(h, shift=s, axis=0), 0.0))
        xs = pieces[0] if len(pieces) == 1 else jnp.concatenate(pieces, axis=-1)
        acc = jnp.dot(xs.astype(jnp.bfloat16), w_ref[...],
                      preferred_element_type=jnp.float32)
        # Eval-mode BatchNorm (+ folded conv bias) and ReLU, f32 epilogue.
        return jnp.maximum(acc * scale + shift, 0.0)

    # Input projection: 1x1 conv (pointwise matmul), no norm / activation.
    h = (jnp.dot(x_ref[...].astype(jnp.bfloat16), pw_ref[...],
                 preferred_element_type=jnp.float32) + pb_ref[...])

    # Residual blocks.  Only the last time step of each skip feeds the head;
    # keep one (B*T, C) running sum and extract the last rows after the loop.
    skip_acc = jnp.zeros((BT, C), jnp.float32)
    for i, shifts in enumerate(shifts_per_block):
        res = h
        u = conv_bn_relu(h, w1_refs[i], s1_ref[i], t1_ref[i], shifts)
        o = conv_bn_relu(u, w2_refs[i], s2_ref[i], t2_ref[i], shifts)
        out_plus_res = o + res                      # ResidualBlock: out + res
        skip_acc = skip_acc + out_plus_res
        h = jnp.maximum(out_plus_res, 0.0)          # relu(out + res) -> next

    # Last time step of each batch element -> single head matmul, single store.
    skip_last = jnp.concatenate(
        [skip_acc[(b + 1) * T - 1:(b + 1) * T, :] for b in range(B)], axis=0)
    y = (jnp.dot(skip_last.astype(jnp.bfloat16), ow_ref[...],
                 preferred_element_type=jnp.float32) + ob_ref[...])
    out_ref[...] = y.astype(out_ref.dtype)


# -------------------------------- wrapper -------------------------------------

def _pad_last(a, new):
    return jnp.pad(a, [(0, 0)] * (a.ndim - 1) + [(0, new - a.shape[-1])])


def tcn_forward(params, x, *, dilations, kernel_size):
    B, T, cin = x.shape
    C = params["proj_w"].shape[-1]
    O = params["out_w"].shape[-1]
    K = kernel_size
    S = len(dilations)

    # Lane-dense channel count (zero-padded; extra lanes stay exactly 0).
    CP = max(128, ((C + 127) // 128) * 128)

    # Static live-tap schedule: tap k of a dilation-d conv reads h[t-(K-1-k)*d];
    # taps whose shift >= T only ever see the zero pad and are dropped.
    shifts_per_block = tuple(
        tuple(s for s in ((K - 1 - k) * d for k in range(K)) if s < T)
        for d in dilations)

    # Fold time: pack live taps along the contraction dim (one matmul per conv),
    # zero-pad channels to CP, cast matmul weights to bf16.
    def pack_conv(w_all, i):
        d = dilations[i]
        live = [k for k in range(K) if (K - 1 - k) * d < T]
        mats = []
        for k in live:
            w = w_all[i, k]                                   # (C, C)
            w = jnp.pad(w, ((0, CP - C), (0, CP - C)))        # (CP, CP)
            mats.append(w)
        return jnp.concatenate(mats, axis=0).astype(jnp.bfloat16)

    w1_packed = [pack_conv(params["w1"], i) for i in range(S)]
    w2_packed = [pack_conv(params["w2"], i) for i in range(S)]

    proj_w = _pad_last(params["proj_w"], CP).astype(jnp.bfloat16)
    proj_b = _pad_last(params["proj_b"], CP)
    scale1 = _pad_last(params["scale1"], CP)
    shift1 = _pad_last(params["shift1"], CP)
    scale2 = _pad_last(params["scale2"], CP)
    shift2 = _pad_last(params["shift2"], CP)
    out_w = jnp.pad(params["out_w"], ((0, CP - C), (0, 0))).astype(jnp.bfloat16)
    out_b = params["out_b"]

    kernel = functools.partial(_tcn_kernel, B=B, T=T,
                               shifts_per_block=shifts_per_block)
    return pl.pallas_call(
        kernel,
        out_shape=jax.ShapeDtypeStruct((B, O), jnp.float32),
    )(x.reshape(B * T, cin),
      proj_w, proj_b,
      scale1, shift1, scale2, shift2,
      out_w, out_b,
      *w1_packed, *w2_packed)


# ------------------------ parameters (eval-mode fold) --------------------------

def init_tcn_params(key, input_dim, nb_filters, kernel_size, dilations,
                    output_dim, eps=1e-5):
    S = len(dilations)
    C = nb_filters
    it = iter(jax.random.split(key, 4 + 12 * S))
    nk = lambda: next(it)

    params = {
        "proj_w": 0.3 * jax.random.normal(nk(), (input_dim, C), jnp.float32),
        "proj_b": 0.1 * jax.random.normal(nk(), (1, C), jnp.float32),
        "out_w": 0.2 * jax.random.normal(nk(), (C, output_dim), jnp.float32),
        "out_b": 0.1 * jax.random.normal(nk(), (1, output_dim), jnp.float32),
    }
    w1l, w2l, sc1l, sh1l, sc2l, sh2l = [], [], [], [], [], []
    for _ in range(S):
        for wl, scl, shl in ((w1l, sc1l, sh1l), (w2l, sc2l, sh2l)):
            w = 0.1 * jax.random.normal(nk(), (kernel_size, C, C), jnp.float32)
            b = 0.1 * jax.random.normal(nk(), (C,), jnp.float32)
            gamma = 1.0 + 0.1 * jax.random.normal(nk(), (C,), jnp.float32)
            beta = 0.1 * jax.random.normal(nk(), (C,), jnp.float32)
            r_mean = 0.1 * jax.random.normal(nk(), (C,), jnp.float32)
            r_var = 1.0 + 0.1 * jnp.abs(jax.random.normal(nk(), (C,), jnp.float32))
            scale = gamma / jnp.sqrt(r_var + eps)          # eval-mode BN fold
            shift = beta - r_mean * scale + b * scale      # conv bias folded in
            wl.append(w)
            scl.append(scale[None, :])
            shl.append(shift[None, :])
    params["w1"] = jnp.stack(w1l)
    params["w2"] = jnp.stack(w2l)
    params["scale1"] = jnp.stack(sc1l)
    params["shift1"] = jnp.stack(sh1l)
    params["scale2"] = jnp.stack(sc2l)
    params["shift2"] = jnp.stack(sh2l)
    return params


# --------------------------- pure-JAX reference --------------------------------

def tcn_reference(params, x, *, dilations, kernel_size):
    B, T, _ = x.shape
    C = params["proj_w"].shape[-1]
    K = kernel_size
    hp = jax.lax.Precision.HIGHEST

    def pointwise(z, w):
        return jnp.einsum("btc,cf->btf", z, w, precision=hp)

    def conv(h, w, scale, shift, d):
        acc = jnp.zeros((B, T, C), jnp.float32)
        for k in range(K):
            s = (K - 1 - k) * d
            hshift = jnp.pad(h, ((0, 0), (s, 0), (0, 0)))[:, :T, :]
            acc = acc + pointwise(hshift, w[k])
        return jnp.maximum(acc * scale + shift, 0.0)

    h = pointwise(x, params["proj_w"]) + params["proj_b"][0]
    skip = jnp.zeros((B, C), jnp.float32)
    for i, d in enumerate(dilations):
        res = h
        u = conv(h, params["w1"][i], params["scale1"][i], params["shift1"][i], d)
        o = conv(u, params["w2"][i], params["scale2"][i], params["shift2"][i], d)
        s = o + res
        skip = skip + s[:, T - 1, :]
        h = jnp.maximum(s, 0.0)
    return jnp.dot(skip, params["out_w"], precision=hp) + params["out_b"][0]


# ----------------------------------- main --------------------------------------

if __name__ == "__main__":
    B, T, input_dim = 2, 16, 4
    nb_filters, kernel_size, output_dim = 64, 3, 7
    dilations = (1, 2, 4, 8, 16, 32)

    key = jax.random.PRNGKey(0)
    kp, kx = jax.random.split(key)
    params = init_tcn_params(kp, input_dim, nb_filters, kernel_size,
                             dilations, output_dim)
    x = jax.random.normal(kx, (B, T, input_dim), jnp.float32)

    out = tcn_forward(params, x, dilations=dilations, kernel_size=kernel_size)
    out = jax.block_until_ready(out)
    assert out.shape == (B, output_dim), out.shape
    assert bool(jnp.all(jnp.isfinite(out)))

    # Reference is f32 HIGHEST; the kernel uses bf16 matmul operands with f32
    # accumulation, so tolerance accounts for bf16 rounding through 13 chained
    # matmuls (per review: re-validated tolerance after the bf16 change).
    ref = tcn_reference(params, x, dilations=dilations, kernel_size=kernel_size)
    assert bool(jnp.allclose(out, ref, rtol=5e-2, atol=1e-1)), (
        float(jnp.max(jnp.abs(out - ref))))
    print("KERNEL_OK")
</pallas_src>

<mosaic_0001>
module attributes {stable_mosaic.version = 11 : i64} {
  func.func @_tcn_kernel(%arg0: memref<32x4xf32, #tpu.memory_space<vmem>>, %arg1: memref<4x128xbf16, #tpu.memory_space<vmem>>, %arg2: memref<1x128xf32, #tpu.memory_space<vmem>>, %arg3: memref<6x1x128xf32, #tpu.memory_space<vmem>>, %arg4: memref<6x1x128xf32, #tpu.memory_space<vmem>>, %arg5: memref<6x1x128xf32, #tpu.memory_space<vmem>>, %arg6: memref<6x1x128xf32, #tpu.memory_space<vmem>>, %arg7: memref<128x7xbf16, #tpu.memory_space<vmem>>, %arg8: memref<1x7xf32, #tpu.memory_space<vmem>>, %arg9: memref<384x128xbf16, #tpu.memory_space<vmem>>, %arg10: memref<384x128xbf16, #tpu.memory_space<vmem>>, %arg11: memref<384x128xbf16, #tpu.memory_space<vmem>>, %arg12: memref<256x128xbf16, #tpu.memory_space<vmem>>, %arg13: memref<128x128xbf16, #tpu.memory_space<vmem>>, %arg14: memref<128x128xbf16, #tpu.memory_space<vmem>>, %arg15: memref<384x128xbf16, #tpu.memory_space<vmem>>, %arg16: memref<384x128xbf16, #tpu.memory_space<vmem>>, %arg17: memref<384x128xbf16, #tpu.memory_space<vmem>>, %arg18: memref<256x128xbf16, #tpu.memory_space<vmem>>, %arg19: memref<128x128xbf16, #tpu.memory_space<vmem>>, %arg20: memref<128x128xbf16, #tpu.memory_space<vmem>>, %arg21: memref<2x7xf32, #tpu.memory_space<vmem>>) attributes {dimension_semantics = [], scalar_prefetch = 0 : i64, scratch_operands = 0 : i64, tpu.core_type = #tpu.core_type<tc>} {
    %0 = tpu.iota {dimensions = array<i32: 0>} : vector<32x128xi32>
    %c16_i32 = arith.constant 16 : i32
    %c0_i32 = arith.constant 0 : i32
    %1 = arith.cmpi eq, %c16_i32, %c0_i32 : i32
    %c1_i32 = arith.constant 1 : i32
    %2 = arith.select %1, %c1_i32, %c16_i32 : i32
    %3 = vector.broadcast %2 : i32 to vector<32x128xi32>
    %4 = arith.remsi %0, %3 : vector<32x128xi32>
    %c0_i32_0 = arith.constant 0 : i32
    %5 = vector.broadcast %c0_i32_0 : i32 to vector<32x128xi32>
    %6 = arith.cmpi ne, %4, %5 : vector<32x128xi32>
    %c0_i32_1 = arith.constant 0 : i32
    %7 = vector.broadcast %c0_i32_1 : i32 to vector<32x128xi32>
    %8 = arith.cmpi slt, %4, %7 : vector<32x128xi32>
    %c0_i32_2 = arith.constant 0 : i32
    %9 = arith.cmpi slt, %2, %c0_i32_2 : i32
    %10 = vector.broadcast %9 : i1 to vector<32x128xi1>
    %11 = vector.broadcast %10 : vector<32x128xi1> to vector<32x128xi1>
    %12 = arith.xori %8, %11 : vector<32x128xi1>
    %13 = arith.andi %12, %6 : vector<32x128xi1>
    %14 = vector.broadcast %2 : i32 to vector<32x128xi32>
    %15 = arith.addi %4, %14 : vector<32x128xi32>
    %16 = arith.select %13, %15, %4 : vector<32x128xi1>, vector<32x128xi32>
    %c1_i32_3 = arith.constant 1 : i32
    %17 = vector.broadcast %c1_i32_3 : i32 to vector<32x128xi32>
    %18 = arith.cmpi sge, %16, %17 : vector<32x128xi32>
    %c2_i32 = arith.constant 2 : i32
    %19 = vector.broadcast %c2_i32 : i32 to vector<32x128xi32>
    %20 = arith.cmpi sge, %16, %19 : vector<32x128xi32>
    %c4_i32 = arith.constant 4 : i32
    %21 = vector.broadcast %c4_i32 : i32 to vector<32x128xi32>
    %22 = arith.cmpi sge, %16, %21 : vector<32x128xi32>
    %c8_i32 = arith.constant 8 : i32
    %23 = vector.broadcast %c8_i32 : i32 to vector<32x128xi32>
    %24 = arith.cmpi sge, %16, %23 : vector<32x128xi32>
    %c0 = arith.constant 0 : index
    %c0_4 = arith.constant 0 : index
    %25 = vector.load %arg0[%c0, %c0_4] : memref<32x4xf32, #tpu.memory_space<vmem>>, vector<32x4xf32>
    %26 = arith.truncf %25 : vector<32x4xf32> to vector<32x4xbf16>
    %c0_5 = arith.constant 0 : index
    %c0_6 = arith.constant 0 : index
    %27 = vector.load %arg1[%c0_5, %c0_6] : memref<4x128xbf16, #tpu.memory_space<vmem>>, vector<4x128xbf16>
    %cst = arith.constant dense<0.000000e+00> : vector<32x128xf32>
    %28 = tpu.matmul %26, %27, %cst {dimension_numbers = #tpu.dot_dimension_numbers<[1], [0], [0], [1], [0, 0, 1, 1], [], []>} : vector<32x4xbf16>, vector<4x128xbf16>, vector<32x128xf32> -> vector<32x128xf32>
    %c0_7 = arith.constant 0 : index
    %c0_8 = arith.constant 0 : index
    %29 = vector.load %arg2[%c0_7, %c0_8] : memref<1x128xf32, #tpu.memory_space<vmem>>, vector<1x128xf32>
    %30 = vector.broadcast %29 : vector<1x128xf32> to vector<32x128xf32>
    %31 = arith.addf %28, %30 : vector<32x128xf32>
    %cst_9 = arith.constant 0.000000e+00 : f32
    %32 = vector.broadcast %cst_9 : f32 to vector<32x128xf32>
    %c0_10 = arith.constant 0 : index
    %c0_11 = arith.constant 0 : index
    %c0_12 = arith.constant 0 : index
    %33 = vector.load %arg3[%c0_10, %c0_11, %c0_12] : memref<6x1x128xf32, #tpu.memory_space<vmem>>, vector<1x1x128xf32>
    %34 = vector.shape_cast %33 : vector<1x1x128xf32> to vector<1x128xf32>
    %c0_13 = arith.constant 0 : index
    %c0_14 = arith.constant 0 : index
    %c0_15 = arith.constant 0 : index
    %35 = vector.load %arg4[%c0_13, %c0_14, %c0_15] : memref<6x1x128xf32, #tpu.memory_space<vmem>>, vector<1x1x128xf32>
    %36 = vector.shape_cast %35 : vector<1x1x128xf32> to vector<1x128xf32>
    %c2_i32_16 = arith.constant 2 : i32
    %37 = tpu.dynamic_rotate %31 by %c2_i32_16 dim 0 : vector<32x128xf32>, i32 -> vector<32x128xf32>
    %cst_17 = arith.constant 0.000000e+00 : f32
    %38 = vector.broadcast %cst_17 : f32 to vector<32x128xf32>
    %39 = arith.select %20, %37, %38 : vector<32x128xi1>, vector<32x128xf32>
    %c1_i32_18 = arith.constant 1 : i32
    %40 = tpu.dynamic_rotate %31 by %c1_i32_18 dim 0 : vector<32x128xf32>, i32 -> vector<32x128xf32>
    %cst_19 = arith.constant 0.000000e+00 : f32
    %41 = vector.broadcast %cst_19 : f32 to vector<32x128xf32>
    %42 = arith.select %18, %40, %41 : vector<32x128xi1>, vector<32x128xf32>
    %43 = tpu.concatenate %39, %42, %31 in 1 : vector<32x128xf32>, vector<32x128xf32>, vector<32x128xf32> -> vector<32x384xf32>
    %44 = arith.truncf %43 : vector<32x384xf32> to vector<32x384xbf16>
    %c0_20 = arith.constant 0 : index
    %c0_21 = arith.constant 0 : index
    %45 = vector.load %arg9[%c0_20, %c0_21] : memref<384x128xbf16, #tpu.memory_space<vmem>>, vector<384x128xbf16>
    %cst_22 = arith.constant dense<0.000000e+00> : vector<32x128xf32>
    %46 = tpu.matmul %44, %45, %cst_22 {dimension_numbers = #tpu.dot_dimension_numbers<[1], [0], [0], [1], [0, 0, 1, 1], [], []>} : vector<32x384xbf16>, vector<384x128xbf16>, vector<32x128xf32> -> vector<32x128xf32>
    %47 = vector.broadcast %34 : vector<1x128xf32> to vector<32x128xf32>
    %48 = arith.mulf %46, %47 : vector<32x128xf32>
    %49 = vector.broadcast %36 : vector<1x128xf32> to vector<32x128xf32>
    %50 = arith.addf %48, %49 : vector<32x128xf32>
    %cst_23 = arith.constant 0.000000e+00 : f32
    %51 = vector.broadcast %cst_23 : f32 to vector<32x128xf32>
    %52 = arith.maximumf %50, %51 : vector<32x128xf32>
    %c0_24 = arith.constant 0 : index
    %c0_25 = arith.constant 0 : index
    %c0_26 = arith.constant 0 : index
    %53 = vector.load %arg5[%c0_24, %c0_25, %c0_26] : memref<6x1x128xf32, #tpu.memory_space<vmem>>, vector<1x1x128xf32>
    %54 = vector.shape_cast %53 : vector<1x1x128xf32> to vector<1x128xf32>
    %c0_27 = arith.constant 0 : index
    %c0_28 = arith.constant 0 : index
    %c0_29 = arith.constant 0 : index
    %55 = vector.load %arg6[%c0_27, %c0_28, %c0_29] : memref<6x1x128xf32, #tpu.memory_space<vmem>>, vector<1x1x128xf32>
    %56 = vector.shape_cast %55 : vector<1x1x128xf32> to vector<1x128xf32>
    %c2_i32_30 = arith.constant 2 : i32
    %57 = tpu.dynamic_rotate %52 by %c2_i32_30 dim 0 : vector<32x128xf32>, i32 -> vector<32x128xf32>
    %cst_31 = arith.constant 0.000000e+00 : f32
    %58 = vector.broadcast %cst_31 : f32 to vector<32x128xf32>
    %59 = arith.select %20, %57, %58 : vector<32x128xi1>, vector<32x128xf32>
    %c1_i32_32 = arith.constant 1 : i32
    %60 = tpu.dynamic_rotate %52 by %c1_i32_32 dim 0 : vector<32x128xf32>, i32 -> vector<32x128xf32>
    %cst_33 = arith.constant 0.000000e+00 : f32
    %61 = vector.broadcast %cst_33 : f32 to vector<32x128xf32>
    %62 = arith.select %18, %60, %61 : vector<32x128xi1>, vector<32x128xf32>
    %63 = tpu.concatenate %59, %62, %52 in 1 : vector<32x128xf32>, vector<32x128xf32>, vector<32x128xf32> -> vector<32x384xf32>
    %64 = arith.truncf %63 : vector<32x384xf32> to vector<32x384xbf16>
    %c0_34 = arith.constant 0 : index
    %c0_35 = arith.constant 0 : index
    %65 = vector.load %arg15[%c0_34, %c0_35] : memref<384x128xbf16, #tpu.memory_space<vmem>>, vector<384x128xbf16>
    %cst_36 = arith.constant dense<0.000000e+00> : vector<32x128xf32>
    %66 = tpu.matmul %64, %65, %cst_36 {dimension_numbers = #tpu.dot_dimension_numbers<[1], [0], [0], [1], [0, 0, 1, 1], [], []>} : vector<32x384xbf16>, vector<384x128xbf16>, vector<32x128xf32> -> vector<32x128xf32>
    %67 = vector.broadcast %54 : vector<1x128xf32> to vector<32x128xf32>
    %68 = arith.mulf %66, %67 : vector<32x128xf32>
    %69 = vector.broadcast %56 : vector<1x128xf32> to vector<32x128xf32>
    %70 = arith.addf %68, %69 : vector<32x128xf32>
    %cst_37 = arith.constant 0.000000e+00 : f32
    %71 = vector.broadcast %cst_37 : f32 to vector<32x128xf32>
    %72 = arith.maximumf %70, %71 : vector<32x128xf32>
    %73 = arith.addf %72, %31 : vector<32x128xf32>
    %74 = arith.addf %32, %73 : vector<32x128xf32>
    %cst_38 = arith.constant 0.000000e+00 : f32
    %75 = vector.broadcast %cst_38 : f32 to vector<32x128xf32>
    %76 = arith.maximumf %73, %75 : vector<32x128xf32>
    %c1 = arith.constant 1 : index
    %c0_39 = arith.constant 0 : index
    %c0_40 = arith.constant 0 : index
    %77 = vector.load %arg3[%c1, %c0_39, %c0_40] : memref<6x1x128xf32, #tpu.memory_space<vmem>>, vector<1x1x128xf32>
    %78 = vector.shape_cast %77 : vector<1x1x128xf32> to vector<1x128xf32>
    %c1_41 = arith.constant 1 : index
    %c0_42 = arith.constant 0 : index
    %c0_43 = arith.constant 0 : index
    %79 = vector.load %arg4[%c1_41, %c0_42, %c0_43] : memref<6x1x128xf32, #tpu.memory_space<vmem>>, vector<1x1x128xf32>
    %80 = vector.shape_cast %79 : vector<1x1x128xf32> to vector<1x128xf32>
    %c4_i32_44 = arith.constant 4 : i32
    %81 = tpu.dynamic_rotate %76 by %c4_i32_44 dim 0 : vector<32x128xf32>, i32 -> vector<32x128xf32>
    %cst_45 = arith.constant 0.000000e+00 : f32
    %82 = vector.broadcast %cst_45 : f32 to vector<32x128xf32>
    %83 = arith.select %22, %81, %82 : vector<32x128xi1>, vector<32x128xf32>
    %c2_i32_46 = arith.constant 2 : i32
    %84 = tpu.dynamic_rotate %76 by %c2_i32_46 dim 0 : vector<32x128xf32>, i32 -> vector<32x128xf32>
    %cst_47 = arith.constant 0.000000e+00 : f32
    %85 = vector.broadcast %cst_47 : f32 to vector<32x128xf32>
    %86 = arith.select %20, %84, %85 : vector<32x128xi1>, vector<32x128xf32>
    %87 = tpu.concatenate %83, %86, %76 in 1 : vector<32x128xf32>, vector<32x128xf32>, vector<32x128xf32> -> vector<32x384xf32>
    %88 = arith.truncf %87 : vector<32x384xf32> to vector<32x384xbf16>
    %c0_48 = arith.constant 0 : index
    %c0_49 = arith.constant 0 : index
    %89 = vector.load %arg10[%c0_48, %c0_49] : memref<384x128xbf16, #tpu.memory_space<vmem>>, vector<384x128xbf16>
    %cst_50 = arith.constant dense<0.000000e+00> : vector<32x128xf32>
    %90 = tpu.matmul %88, %89, %cst_50 {dimension_numbers = #tpu.dot_dimension_numbers<[1], [0], [0], [1], [0, 0, 1, 1], [], []>} : vector<32x384xbf16>, vector<384x128xbf16>, vector<32x128xf32> -> vector<32x128xf32>
    %91 = vector.broadcast %78 : vector<1x128xf32> to vector<32x128xf32>
    %92 = arith.mulf %90, %91 : vector<32x128xf32>
    %93 = vector.broadcast %80 : vector<1x128xf32> to vector<32x128xf32>
    %94 = arith.addf %92, %93 : vector<32x128xf32>
    %cst_51 = arith.constant 0.000000e+00 : f32
    %95 = vector.broadcast %cst_51 : f32 to vector<32x128xf32>
    %96 = arith.maximumf %94, %95 : vector<32x128xf32>
    %c1_52 = arith.constant 1 : index
    %c0_53 = arith.constant 0 : index
    %c0_54 = arith.constant 0 : index
    %97 = vector.load %arg5[%c1_52, %c0_53, %c0_54] : memref<6x1x128xf32, #tpu.memory_space<vmem>>, vector<1x1x128xf32>
    %98 = vector.shape_cast %97 : vector<1x1x128xf32> to vector<1x128xf32>
    %c1_55 = arith.constant 1 : index
    %c0_56 = arith.constant 0 : index
    %c0_57 = arith.constant 0 : index
    %99 = vector.load %arg6[%c1_55, %c0_56, %c0_57] : memref<6x1x128xf32, #tpu.memory_space<vmem>>, vector<1x1x128xf32>
    %100 = vector.shape_cast %99 : vector<1x1x128xf32> to vector<1x128xf32>
    %c4_i32_58 = arith.constant 4 : i32
    %101 = tpu.dynamic_rotate %96 by %c4_i32_58 dim 0 : vector<32x128xf32>, i32 -> vector<32x128xf32>
    %cst_59 = arith.constant 0.000000e+00 : f32
    %102 = vector.broadcast %cst_59 : f32 to vector<32x128xf32>
    %103 = arith.select %22, %101, %102 : vector<32x128xi1>, vector<32x128xf32>
    %c2_i32_60 = arith.constant 2 : i32
    %104 = tpu.dynamic_rotate %96 by %c2_i32_60 dim 0 : vector<32x128xf32>, i32 -> vector<32x128xf32>
    %cst_61 = arith.constant 0.000000e+00 : f32
    %105 = vector.broadcast %cst_61 : f32 to vector<32x128xf32>
    %106 = arith.select %20, %104, %105 : vector<32x128xi1>, vector<32x128xf32>
    %107 = tpu.concatenate %103, %106, %96 in 1 : vector<32x128xf32>, vector<32x128xf32>, vector<32x128xf32> -> vector<32x384xf32>
    %108 = arith.truncf %107 : vector<32x384xf32> to vector<32x384xbf16>
    %c0_62 = arith.constant 0 : index
    %c0_63 = arith.constant 0 : index
    %109 = vector.load %arg16[%c0_62, %c0_63] : memref<384x128xbf16, #tpu.memory_space<vmem>>, vector<384x128xbf16>
    %cst_64 = arith.constant dense<0.000000e+00> : vector<32x128xf32>
    %110 = tpu.matmul %108, %109, %cst_64 {dimension_numbers = #tpu.dot_dimension_numbers<[1], [0], [0], [1], [0, 0, 1, 1], [], []>} : vector<32x384xbf16>, vector<384x128xbf16>, vector<32x128xf32> -> vector<32x128xf32>
    %111 = vector.broadcast %98 : vector<1x128xf32> to vector<32x128xf32>
    %112 = arith.mulf %110, %111 : vector<32x128xf32>
    %113 = vector.broadcast %100 : vector<1x128xf32> to vector<32x128xf32>
    %114 = arith.addf %112, %113 : vector<32x128xf32>
    %cst_65 = arith.constant 0.000000e+00 : f32
    %115 = vector.broadcast %cst_65 : f32 to vector<32x128xf32>
    %116 = arith.maximumf %114, %115 : vector<32x128xf32>
    %117 = arith.addf %116, %76 : vector<32x128xf32>
    %118 = arith.addf %74, %117 : vector<32x128xf32>
    %cst_66 = arith.constant 0.000000e+00 : f32
    %119 = vector.broadcast %cst_66 : f32 to vector<32x128xf32>
    %120 = arith.maximumf %117, %119 : vector<32x128xf32>
    %c2 = arith.constant 2 : index
    %c0_67 = arith.constant 0 : index
    %c0_68 = arith.constant 0 : index
    %121 = vector.load %arg3[%c2, %c0_67, %c0_68] : memref<6x1x128xf32, #tpu.memory_space<vmem>>, vector<1x1x128xf32>
    %122 = vector.shape_cast %121 : vector<1x1x128xf32> to vector<1x128xf32>
    %c2_69 = arith.constant 2 : index
    %c0_70 = arith.constant 0 : index
    %c0_71 = arith.constant 0 : index
    %123 = vector.load %arg4[%c2_69, %c0_70, %c0_71] : memref<6x1x128xf32, #tpu.memory_space<vmem>>, vector<1x1x128xf32>
    %124 = vector.shape_cast %123 : vector<1x1x128xf32> to vector<1x128xf32>
    %c8_i32_72 = arith.constant 8 : i32
    %125 = tpu.dynamic_rotate %120 by %c8_i32_72 dim 0 : vector<32x128xf32>, i32 -> vector<32x128xf32>
    %cst_73 = arith.constant 0.000000e+00 : f32
    %126 = vector.broadcast %cst_73 : f32 to vector<32x128xf32>
    %127 = arith.select %24, %125, %126 : vector<32x128xi1>, vector<32x128xf32>
    %c4_i32_74 = arith.constant 4 : i32
    %128 = tpu.dynamic_rotate %120 by %c4_i32_74 dim 0 : vector<32x128xf32>, i32 -> vector<32x128xf32>
    %cst_75 = arith.constant 0.000000e+00 : f32
    %129 = vector.broadcast %cst_75 : f32 to vector<32x128xf32>
    %130 = arith.select %22, %128, %129 : vector<32x128xi1>, vector<32x128xf32>
    %131 = tpu.concatenate %127, %130, %120 in 1 : vector<32x128xf32>, vector<32x128xf32>, vector<32x128xf32> -> vector<32x384xf32>
    %132 = arith.truncf %131 : vector<32x384xf32> to vector<32x384xbf16>
    %c0_76 = arith.constant 0 : index
    %c0_77 = arith.constant 0 : index
    %133 = vector.load %arg11[%c0_76, %c0_77] : memref<384x128xbf16, #tpu.memory_space<vmem>>, vector<384x128xbf16>
    %cst_78 = arith.constant dense<0.000000e+00> : vector<32x128xf32>
    %134 = tpu.matmul %132, %133, %cst_78 {dimension_numbers = #tpu.dot_dimension_numbers<[1], [0], [0], [1], [0, 0, 1, 1], [], []>} : vector<32x384xbf16>, vector<384x128xbf16>, vector<32x128xf32> -> vector<32x128xf32>
    %135 = vector.broadcast %122 : vector<1x128xf32> to vector<32x128xf32>
    %136 = arith.mulf %134, %135 : vector<32x128xf32>
    %137 = vector.broadcast %124 : vector<1x128xf32> to vector<32x128xf32>
    %138 = arith.addf %136, %137 : vector<32x128xf32>
    %cst_79 = arith.constant 0.000000e+00 : f32
    %139 = vector.broadcast %cst_79 : f32 to vector<32x128xf32>
    %140 = arith.maximumf %138, %139 : vector<32x128xf32>
    %c2_80 = arith.constant 2 : index
    %c0_81 = arith.constant 0 : index
    %c0_82 = arith.constant 0 : index
    %141 = vector.load %arg5[%c2_80, %c0_81, %c0_82] : memref<6x1x128xf32, #tpu.memory_space<vmem>>, vector<1x1x128xf32>
    %142 = vector.shape_cast %141 : vector<1x1x128xf32> to vector<1x128xf32>
    %c2_83 = arith.constant 2 : index
    %c0_84 = arith.constant 0 : index
    %c0_85 = arith.constant 0 : index
    %143 = vector.load %arg6[%c2_83, %c0_84, %c0_85] : memref<6x1x128xf32, #tpu.memory_space<vmem>>, vector<1x1x128xf32>
    %144 = vector.shape_cast %143 : vector<1x1x128xf32> to vector<1x128xf32>
    %c8_i32_86 = arith.constant 8 : i32
    %145 = tpu.dynamic_rotate %140 by %c8_i32_86 dim 0 : vector<32x128xf32>, i32 -> vector<32x128xf32>
    %cst_87 = arith.constant 0.000000e+00 : f32
    %146 = vector.broadcast %cst_87 : f32 to vector<32x128xf32>
    %147 = arith.select %24, %145, %146 : vector<32x128xi1>, vector<32x128xf32>
    %c4_i32_88 = arith.constant 4 : i32
    %148 = tpu.dynamic_rotate %140 by %c4_i32_88 dim 0 : vector<32x128xf32>, i32 -> vector<32x128xf32>
    %cst_89 = arith.constant 0.000000e+00 : f32
    %149 = vector.broadcast %cst_89 : f32 to vector<32x128xf32>
    %150 = arith.select %22, %148, %149 : vector<32x128xi1>, vector<32x128xf32>
    %151 = tpu.concatenate %147, %150, %140 in 1 : vector<32x128xf32>, vector<32x128xf32>, vector<32x128xf32> -> vector<32x384xf32>
    %152 = arith.truncf %151 : vector<32x384xf32> to vector<32x384xbf16>
    %c0_90 = arith.constant 0 : index
    %c0_91 = arith.constant 0 : index
    %153 = vector.load %arg17[%c0_90, %c0_91] : memref<384x128xbf16, #tpu.memory_space<vmem>>, vector<384x128xbf16>
    %cst_92 = arith.constant dense<0.000000e+00> : vector<32x128xf32>
    %154 = tpu.matmul %152, %153, %cst_92 {dimension_numbers = #tpu.dot_dimension_numbers<[1], [0], [0], [1], [0, 0, 1, 1], [], []>} : vector<32x384xbf16>, vector<384x128xbf16>, vector<32x128xf32> -> vector<32x128xf32>
    %155 = vector.broadcast %142 : vector<1x128xf32> to vector<32x128xf32>
    %156 = arith.mulf %154, %155 : vector<32x128xf32>
    %157 = vector.broadcast %144 : vector<1x128xf32> to vector<32x128xf32>
    %158 = arith.addf %156, %157 : vector<32x128xf32>
    %cst_93 = arith.constant 0.000000e+00 : f32
    %159 = vector.broadcast %cst_93 : f32 to vector<32x128xf32>
    %160 = arith.maximumf %158, %159 : vector<32x128xf32>
    %161 = arith.addf %160, %120 : vector<32x128xf32>
    %162 = arith.addf %118, %161 : vector<32x128xf32>
    %cst_94 = arith.constant 0.000000e+00 : f32
    %163 = vector.broadcast %cst_94 : f32 to vector<32x128xf32>
    %164 = arith.maximumf %161, %163 : vector<32x128xf32>
    %c3 = arith.constant 3 : index
    %c0_95 = arith.constant 0 : index
    %c0_96 = arith.constant 0 : index
    %165 = vector.load %arg3[%c3, %c0_95, %c0_96] : memref<6x1x128xf32, #tpu.memory_space<vmem>>, vector<1x1x128xf32>
    %166 = vector.shape_cast %165 : vector<1x1x128xf32> to vector<1x128xf32>
    %c3_97 = arith.constant 3 : index
    %c0_98 = arith.constant 0 : index
    %c0_99 = arith.constant 0 : index
    %167 = vector.load %arg4[%c3_97, %c0_98, %c0_99] : memref<6x1x128xf32, #tpu.memory_space<vmem>>, vector<1x1x128xf32>
    %168 = vector.shape_cast %167 : vector<1x1x128xf32> to vector<1x128xf32>
    %c8_i32_100 = arith.constant 8 : i32
    %169 = tpu.dynamic_rotate %164 by %c8_i32_100 dim 0 : vector<32x128xf32>, i32 -> vector<32x128xf32>
    %cst_101 = arith.constant 0.000000e+00 : f32
    %170 = vector.broadcast %cst_101 : f32 to vector<32x128xf32>
    %171 = arith.select %24, %169, %170 : vector<32x128xi1>, vector<32x128xf32>
    %172 = tpu.concatenate %171, %164 in 1 : vector<32x128xf32>, vector<32x128xf32> -> vector<32x256xf32>
    %173 = arith.truncf %172 : vector<32x256xf32> to vector<32x256xbf16>
    %c0_102 = arith.constant 0 : index
    %c0_103 = arith.constant 0 : index
    %174 = vector.load %arg12[%c0_102, %c0_103] : memref<256x128xbf16, #tpu.memory_space<vmem>>, vector<256x128xbf16>
    %cst_104 = arith.constant dense<0.000000e+00> : vector<32x128xf32>
    %175 = tpu.matmul %173, %174, %cst_104 {dimension_numbers = #tpu.dot_dimension_numbers<[1], [0], [0], [1], [0, 0, 1, 1], [], []>} : vector<32x256xbf16>, vector<256x128xbf16>, vector<32x128xf32> -> vector<32x128xf32>
    %176 = vector.broadcast %166 : vector<1x128xf32> to vector<32x128xf32>
    %177 = arith.mulf %175, %176 : vector<32x128xf32>
    %178 = vector.broadcast %168 : vector<1x128xf32> to vector<32x128xf32>
    %179 = arith.addf %177, %178 : vector<32x128xf32>
    %cst_105 = arith.constant 0.000000e+00 : f32
    %180 = vector.broadcast %cst_105 : f32 to vector<32x128xf32>
    %181 = arith.maximumf %179, %180 : vector<32x128xf32>
    %c3_106 = arith.constant 3 : index
    %c0_107 = arith.constant 0 : index
    %c0_108 = arith.constant 0 : index
    %182 = vector.load %arg5[%c3_106, %c0_107, %c0_108] : memref<6x1x128xf32, #tpu.memory_space<vmem>>, vector<1x1x128xf32>
    %183 = vector.shape_cast %182 : vector<1x1x128xf32> to vector<1x128xf32>
    %c3_109 = arith.constant 3 : index
    %c0_110 = arith.constant 0 : index
    %c0_111 = arith.constant 0 : index
    %184 = vector.load %arg6[%c3_109, %c0_110, %c0_111] : memref<6x1x128xf32, #tpu.memory_space<vmem>>, vector<1x1x128xf32>
    %185 = vector.shape_cast %184 : vector<1x1x128xf32> to vector<1x128xf32>
    %c8_i32_112 = arith.constant 8 : i32
    %186 = tpu.dynamic_rotate %181 by %c8_i32_112 dim 0 : vector<32x128xf32>, i32 -> vector<32x128xf32>
    %cst_113 = arith.constant 0.000000e+00 : f32
    %187 = vector.broadcast %cst_113 : f32 to vector<32x128xf32>
    %188 = arith.select %24, %186, %187 : vector<32x128xi1>, vector<32x128xf32>
    %189 = tpu.concatenate %188, %181 in 1 : vector<32x128xf32>, vector<32x128xf32> -> vector<32x256xf32>
    %190 = arith.truncf %189 : vector<32x256xf32> to vector<32x256xbf16>
    %c0_114 = arith.constant 0 : index
    %c0_115 = arith.constant 0 : index
    %191 = vector.load %arg18[%c0_114, %c0_115] : memref<256x128xbf16, #tpu.memory_space<vmem>>, vector<256x128xbf16>
    %cst_116 = arith.constant dense<0.000000e+00> : vector<32x128xf32>
    %192 = tpu.matmul %190, %191, %cst_116 {dimension_numbers = #tpu.dot_dimension_numbers<[1], [0], [0], [1], [0, 0, 1, 1], [], []>} : vector<32x256xbf16>, vector<256x128xbf16>, vector<32x128xf32> -> vector<32x128xf32>
    %193 = vector.broadcast %183 : vector<1x128xf32> to vector<32x128xf32>
    %194 = arith.mulf %192, %193 : vector<32x128xf32>
    %195 = vector.broadcast %185 : vector<1x128xf32> to vector<32x128xf32>
    %196 = arith.addf %194, %195 : vector<32x128xf32>
    %cst_117 = arith.constant 0.000000e+00 : f32
    %197 = vector.broadcast %cst_117 : f32 to vector<32x128xf32>
    %198 = arith.maximumf %196, %197 : vector<32x128xf32>
    %199 = arith.addf %198, %164 : vector<32x128xf32>
    %200 = arith.addf %162, %199 : vector<32x128xf32>
    %cst_118 = arith.constant 0.000000e+00 : f32
    %201 = vector.broadcast %cst_118 : f32 to vector<32x128xf32>
    %202 = arith.maximumf %199, %201 : vector<32x128xf32>
    %c4 = arith.constant 4 : index
    %c0_119 = arith.constant 0 : index
    %c0_120 = arith.constant 0 : index
    %203 = vector.load %arg3[%c4, %c0_119, %c0_120] : memref<6x1x128xf32, #tpu.memory_space<vmem>>, vector<1x1x128xf32>
    %204 = vector.shape_cast %203 : vector<1x1x128xf32> to vector<1x128xf32>
    %c4_121 = arith.constant 4 : index
    %c0_122 = arith.constant 0 : index
    %c0_123 = arith.constant 0 : index
    %205 = vector.load %arg4[%c4_121, %c0_122, %c0_123] : memref<6x1x128xf32, #tpu.memory_space<vmem>>, vector<1x1x128xf32>
    %206 = vector.shape_cast %205 : vector<1x1x128xf32> to vector<1x128xf32>
    %207 = arith.truncf %202 : vector<32x128xf32> to vector<32x128xbf16>
    %c0_124 = arith.constant 0 : index
    %c0_125 = arith.constant 0 : index
    %208 = vector.load %arg13[%c0_124, %c0_125] : memref<128x128xbf16, #tpu.memory_space<vmem>>, vector<128x128xbf16>
    %cst_126 = arith.constant dense<0.000000e+00> : vector<32x128xf32>
    %209 = tpu.matmul %207, %208, %cst_126 {dimension_numbers = #tpu.dot_dimension_numbers<[1], [0], [0], [1], [0, 0, 1, 1], [], []>} : vector<32x128xbf16>, vector<128x128xbf16>, vector<32x128xf32> -> vector<32x128xf32>
    %210 = vector.broadcast %204 : vector<1x128xf32> to vector<32x128xf32>
    %211 = arith.mulf %209, %210 : vector<32x128xf32>
    %212 = vector.broadcast %206 : vector<1x128xf32> to vector<32x128xf32>
    %213 = arith.addf %211, %212 : vector<32x128xf32>
    %cst_127 = arith.constant 0.000000e+00 : f32
    %214 = vector.broadcast %cst_127 : f32 to vector<32x128xf32>
    %215 = arith.maximumf %213, %214 : vector<32x128xf32>
    %c4_128 = arith.constant 4 : index
    %c0_129 = arith.constant 0 : index
    %c0_130 = arith.constant 0 : index
    %216 = vector.load %arg5[%c4_128, %c0_129, %c0_130] : memref<6x1x128xf32, #tpu.memory_space<vmem>>, vector<1x1x128xf32>
    %217 = vector.shape_cast %216 : vector<1x1x128xf32> to vector<1x128xf32>
    %c4_131 = arith.constant 4 : index
    %c0_132 = arith.constant 0 : index
    %c0_133 = arith.constant 0 : index
    %218 = vector.load %arg6[%c4_131, %c0_132, %c0_133] : memref<6x1x128xf32, #tpu.memory_space<vmem>>, vector<1x1x128xf32>
    %219 = vector.shape_cast %218 : vector<1x1x128xf32> to vector<1x128xf32>
    %220 = arith.truncf %215 : vector<32x128xf32> to vector<32x128xbf16>
    %c0_134 = arith.constant 0 : index
    %c0_135 = arith.constant 0 : index
    %221 = vector.load %arg19[%c0_134, %c0_135] : memref<128x128xbf16, #tpu.memory_space<vmem>>, vector<128x128xbf16>
    %cst_136 = arith.constant dense<0.000000e+00> : vector<32x128xf32>
    %222 = tpu.matmul %220, %221, %cst_136 {dimension_numbers = #tpu.dot_dimension_numbers<[1], [0], [0], [1], [0, 0, 1, 1], [], []>} : vector<32x128xbf16>, vector<128x128xbf16>, vector<32x128xf32> -> vector<32x128xf32>
    %223 = vector.broadcast %217 : vector<1x128xf32> to vector<32x128xf32>
    %224 = arith.mulf %222, %223 : vector<32x128xf32>
    %225 = vector.broadcast %219 : vector<1x128xf32> to vector<32x128xf32>
    %226 = arith.addf %224, %225 : vector<32x128xf32>
    %cst_137 = arith.constant 0.000000e+00 : f32
    %227 = vector.broadcast %cst_137 : f32 to vector<32x128xf32>
    %228 = arith.maximumf %226, %227 : vector<32x128xf32>
    %229 = arith.addf %228, %202 : vector<32x128xf32>
    %230 = arith.addf %200, %229 : vector<32x128xf32>
    %cst_138 = arith.constant 0.000000e+00 : f32
    %231 = vector.broadcast %cst_138 : f32 to vector<32x128xf32>
    %232 = arith.maximumf %229, %231 : vector<32x128xf32>
    %c5 = arith.constant 5 : index
    %c0_139 = arith.constant 0 : index
    %c0_140 = arith.constant 0 : index
    %233 = vector.load %arg3[%c5, %c0_139, %c0_140] : memref<6x1x128xf32, #tpu.memory_space<vmem>>, vector<1x1x128xf32>
    %234 = vector.shape_cast %233 : vector<1x1x128xf32> to vector<1x128xf32>
    %c5_141 = arith.constant 5 : index
    %c0_142 = arith.constant 0 : index
    %c0_143 = arith.constant 0 : index
    %235 = vector.load %arg4[%c5_141, %c0_142, %c0_143] : memref<6x1x128xf32, #tpu.memory_space<vmem>>, vector<1x1x128xf32>
    %236 = vector.shape_cast %235 : vector<1x1x128xf32> to vector<1x128xf32>
    %237 = arith.truncf %232 : vector<32x128xf32> to vector<32x128xbf16>
    %c0_144 = arith.constant 0 : index
    %c0_145 = arith.constant 0 : index
    %238 = vector.load %arg14[%c0_144, %c0_145] : memref<128x128xbf16, #tpu.memory_space<vmem>>, vector<128x128xbf16>
    %cst_146 = arith.constant dense<0.000000e+00> : vector<32x128xf32>
    %239 = tpu.matmul %237, %238, %cst_146 {dimension_numbers = #tpu.dot_dimension_numbers<[1], [0], [0], [1], [0, 0, 1, 1], [], []>} : vector<32x128xbf16>, vector<128x128xbf16>, vector<32x128xf32> -> vector<32x128xf32>
    %240 = vector.broadcast %234 : vector<1x128xf32> to vector<32x128xf32>
    %241 = arith.mulf %239, %240 : vector<32x128xf32>
    %242 = vector.broadcast %236 : vector<1x128xf32> to vector<32x128xf32>
    %243 = arith.addf %241, %242 : vector<32x128xf32>
    %cst_147 = arith.constant 0.000000e+00 : f32
    %244 = vector.broadcast %cst_147 : f32 to vector<32x128xf32>
    %245 = arith.maximumf %243, %244 : vector<32x128xf32>
    %c5_148 = arith.constant 5 : index
    %c0_149 = arith.constant 0 : index
    %c0_150 = arith.constant 0 : index
    %246 = vector.load %arg5[%c5_148, %c0_149, %c0_150] : memref<6x1x128xf32, #tpu.memory_space<vmem>>, vector<1x1x128xf32>
    %247 = vector.shape_cast %246 : vector<1x1x128xf32> to vector<1x128xf32>
    %c5_151 = arith.constant 5 : index
    %c0_152 = arith.constant 0 : index
    %c0_153 = arith.constant 0 : index
    %248 = vector.load %arg6[%c5_151, %c0_152, %c0_153] : memref<6x1x128xf32, #tpu.memory_space<vmem>>, vector<1x1x128xf32>
    %249 = vector.shape_cast %248 : vector<1x1x128xf32> to vector<1x128xf32>
    %250 = arith.truncf %245 : vector<32x128xf32> to vector<32x128xbf16>
    %c0_154 = arith.constant 0 : index
    %c0_155 = arith.constant 0 : index
    %251 = vector.load %arg20[%c0_154, %c0_155] : memref<128x128xbf16, #tpu.memory_space<vmem>>, vector<128x128xbf16>
    %cst_156 = arith.constant dense<0.000000e+00> : vector<32x128xf32>
    %252 = tpu.matmul %250, %251, %cst_156 {dimension_numbers = #tpu.dot_dimension_numbers<[1], [0], [0], [1], [0, 0, 1, 1], [], []>} : vector<32x128xbf16>, vector<128x128xbf16>, vector<32x128xf32> -> vector<32x128xf32>
    %253 = vector.broadcast %247 : vector<1x128xf32> to vector<32x128xf32>
    %254 = arith.mulf %252, %253 : vector<32x128xf32>
    %255 = vector.broadcast %249 : vector<1x128xf32> to vector<32x128xf32>
    %256 = arith.addf %254, %255 : vector<32x128xf32>
    %cst_157 = arith.constant 0.000000e+00 : f32
    %257 = vector.broadcast %cst_157 : f32 to vector<32x128xf32>
    %258 = arith.maximumf %256, %257 : vector<32x128xf32>
    %259 = arith.addf %258, %232 : vector<32x128xf32>
    %260 = arith.addf %230, %259 : vector<32x128xf32>
    %261 = vector.extract_strided_slice %260 {offsets = [15, 0], sizes = [1, 128], strides = [1, 1]} : vector<32x128xf32> to vector<1x128xf32>
    %262 = vector.extract_strided_slice %260 {offsets = [31, 0], sizes = [1, 128], strides = [1, 1]} : vector<32x128xf32> to vector<1x128xf32>
    %263 = tpu.concatenate %261, %262 in 0 : vector<1x128xf32>, vector<1x128xf32> -> vector<2x128xf32>
    %264 = arith.truncf %263 : vector<2x128xf32> to vector<2x128xbf16>
    %c0_158 = arith.constant 0 : index
    %c0_159 = arith.constant 0 : index
    %265 = vector.load %arg7[%c0_158, %c0_159] : memref<128x7xbf16, #tpu.memory_space<vmem>>, vector<128x7xbf16>
    %cst_160 = arith.constant dense<0.000000e+00> : vector<2x7xf32>
    %266 = tpu.matmul %264, %265, %cst_160 {dimension_numbers = #tpu.dot_dimension_numbers<[1], [0], [0], [1], [0, 0, 1, 1], [], []>} : vector<2x128xbf16>, vector<128x7xbf16>, vector<2x7xf32> -> vector<2x7xf32>
    %c0_161 = arith.constant 0 : index
    %c0_162 = arith.constant 0 : index
    %267 = vector.load %arg8[%c0_161, %c0_162] : memref<1x7xf32, #tpu.memory_space<vmem>>, vector<1x7xf32>
    %268 = vector.broadcast %267 : vector<1x7xf32> to vector<2x7xf32>
    %269 = arith.addf %266, %268 : vector<2x7xf32>
    %c0_163 = arith.constant 0 : index
    %c0_164 = arith.constant 0 : index
    %270 = vector.load %arg21[%c0_163, %c0_164] : memref<2x7xf32, #tpu.memory_space<vmem>>, vector<2x7xf32>
    tpu.vector_store %arg21[%c0_163, %c0_164], %269 {strides = array<i32>} : memref<2x7xf32, #tpu.memory_space<vmem>>, vector<2x7xf32>,
    return
  }
}

</mosaic_0001>

<bundles_post_ra>
// kernel: tpu_custom_call.1
= control target key start
LH: loop header
LB: loop body
LE: loop exit
PB: predicated region body
PF: predicated region fallthrough
CT: control target
= control target key end

     0   :  { %s5932_s0 = inlined_call_operand.vmem [shape: f32[32,4], index: 0, kind: input, shape index: {}]   ;;  %s5933_s1 = inlined_call_operand.vmem [shape: bf16[4,128], index: 1, kind: input, shape index: {}]   ;;  %s5934_s2 = inlined_call_operand.vmem [shape: f32[1,128], index: 2, kind: input, shape index: {}]   ;;  %s5935_s3 = inlined_call_operand.vmem [shape: f32[6,1,128], index: 3, kind: input, shape index: {}]   ;;  %s5936_s4 = inlined_call_operand.vmem [shape: f32[6,1,128], index: 4, kind: input, shape index: {}]   ;;  %s5937_s5 = inlined_call_operand.vmem [shape: f32[6,1,128], index: 5, kind: input, shape index: {}]   ;;  %s5938_s6 = inlined_call_operand.hbm [shape: f32[6,1,128], index: 6, kind: input, shape index: {}]   ;;  %s5939_s7 = inlined_call_operand.vmem [shape: bf16[128,7], index: 7, kind: input, shape index: {}]   ;;  %s5940_s8 = inlined_call_operand.hbm [shape: f32[1,7], index: 8, kind: input, shape index: {}]   ;;  %s5941_s9 = inlined_call_operand.hbm [shape: bf16[384,128], index: 9, kind: input, shape index: {}]   ;;  %s5942_s10 = inlined_call_operand.hbm [shape: bf16[384,128], index: 10, kind: input, shape index: {}]   ;;  %s5943_s11 = inlined_call_operand.hbm [shape: bf16[384,128], index: 11, kind: input, shape index: {}]   ;;  %s5944_s12 = inlined_call_operand.vmem [shape: bf16[256,128], index: 12, kind: input, shape index: {}]   ;;  %s5945_s13 = inlined_call_operand.hbm [shape: bf16[128,128], index: 13, kind: input, shape index: {}]   ;;  %s5946_s14 = inlined_call_operand.hbm [shape: bf16[128,128], index: 14, kind: input, shape index: {}]   ;;  %s5947_s15 = inlined_call_operand.hbm [shape: bf16[384,128], index: 15, kind: input, shape index: {}]   ;;  %s5948_s16 = inlined_call_operand.hbm [shape: bf16[384,128], index: 16, kind: input, shape index: {}]   ;;  %s5949_s17 = inlined_call_operand.hbm [shape: bf16[384,128], index: 17, kind: input, shape index: {}]   ;;  %s5950_s18 = inlined_call_operand.hbm [shape: bf16[256,128], index: 18, kind: input, shape index: {}]   ;;  %s5951_s19 = inlined_call_operand.hbm [shape: bf16[128,128], index: 19, kind: input, shape index: {}]   ;;  %s5952_s20 = inlined_call_operand.hbm [shape: bf16[128,128], index: 20, kind: input, shape index: {}]   ;;  %s5953_s21 = inlined_call_operand.hbm [shape: f32[2,7], index: 21, kind: output, shape index: {}]  }
   0x1   :  { %5958 = sst [smem:[#allocation32_spill]] %s5932_s0 }
   0x2   :  { %5959 = sst [smem:[#allocation33_spill]] %s5933_s1 }
   0x3   :  { %5960 = sst [smem:[#allocation34_spill]] %s5934_s2 }
   0x4   :  { %5961 = sst [smem:[#allocation35_spill]] %s5935_s3 }
   0x5   :  { %5962 = sst [smem:[#allocation36_spill]] %s5936_s4 }
   0x6   :  { %5963 = sst [smem:[#allocation37_spill]] %s5937_s5 }
   0x7   :  { %26 = vsyncpa [#allocation3], 0 }
   0x8   :  { %27 = vsyncpa [#allocation6], 0 }
   0x9   :  { %28 = vsyncpa [#allocation9], 0 }
   0xa   :  { %29 = vsyncpa [#allocation12], 0 }
   0xb   :  { %30 = vsyncpa [#allocation15], 0 }
   0xc   :  { %31 = vsyncpa [#allocation18], 0 }
   0xd   :  { %32 = vsyncpa [#allocation21], 0 }
   0xe   :  { %33 = vsyncpa [#allocation4], 0  ;;  %s5088_s2 = smov [#allocation5]   ;;  %s4764_s3 = scalar_lea.hbm %s5940_s8, 16 }
   0xf   :  { %s66_s25 = sshll.u32 %s5088_s2, 4  ;;  %p4765_p0 = scmp.ne.s32.totalorder %s5940_s8, %s4764_s3  ;;  %s67_s25 = int_to_ptr.vmem [resolvable:$true] %s66_s25 }
  0x10   :  { %p4768_p1 = scmp.lt.u32.totalorder %s4764_s3, %s5940_s8 }
  0x12   :  { %p4770_p2 = pnand %p4768_p1, %p4765_p0 }
  0x14   :  { %4773 = shalt.err (!%p4770_p2)
}
  0x15   :  { %s4774_s30 = scalar_lea.vmem %s67_s25, 16  ;;  %s4778_s5 = scalar_lea.vmem %s67_s25, 32 }
  0x16   :  { %p4775_p3 = scmp.ne.s32.totalorder %s67_s25, %s4774_s30  ;;  %p4779_p4 = scmp.lt.s32.totalorder %s67_s25, %s67_s25 }
  0x17   :  { %p4780_p5 = scmp.lt.s32.totalorder %s4778_s5, %s4774_s30 }
  0x19   :  { %p4781_p6 = por %p4780_p5, %p4779_p4 }
  0x1b   :  { %p4782_p7 = pnand %p4781_p6, %p4775_p3 }
  0x1d   :  { %4785 = shalt.err (!%p4782_p7)
}
  0x1e   :  { %69 = dma.hbm_to_vmem [thread:$0]  %s5940_s8, 16, %s67_s25, [#allocation6]  }
  0x1f   :  { %s5089_s1 = smov [#allocation8]   ;;  %s5090_s2 = smov [#allocation11]  }
  0x20   :  { %s87_s24 = sshll.u32 %s5089_s1, 4  ;;  %s113_s26 = sshll.u32 %s5090_s2, 4  ;;  %s88_s24 = int_to_ptr.vmem [resolvable:$true] %s87_s24  ;;  %s114_s26 = int_to_ptr.vmem [resolvable:$true] %s113_s26 }
  0x21   :  { %s4786_s28 = scalar_lea.hbm %s5942_s10, 3072 }
  0x22   :  { %p4787_p8 = scmp.ne.s32.totalorder %s5942_s10, %s4786_s28  ;;  %p4790_p9 = scmp.lt.u32.totalorder %s4786_s28, %s5942_s10 }
  0x24   :  { %p4792_p10 = pnand %p4790_p9, %p4787_p8 }
  0x26   :  { %4795 = shalt.err (!%p4792_p10)
}
  0x27   :  { %s4796_s8 = scalar_lea.vmem %s88_s24, 3072  ;;  %p4801_p12 = scmp.lt.s32.totalorder %s88_s24, %s88_s24 }
  0x28   :  { %p4797_p11 = scmp.ne.s32.totalorder %s88_s24, %s4796_s8  ;;  %p4802_p13 = scmp.lt.s32.totalorder %s4796_s8, %s4796_s8 }
  0x2a   :  { %p4803_p0 = por %p4802_p13, %p4801_p12 }
  0x2c   :  { %p4804_p1 = pnand %p4803_p0, %p4797_p11 }
  0x2e   :  { %4807 = shalt.err (!%p4804_p1)
}
  0x2f   :  { %s5091_s25 = smov 64   ;;  %s5092_s5 = smov 4  }
  0x30   :  { %93 = dma.hbm_to_vmem [thread:$0]  %s5942_s10, 3072, %s88_s24, [#allocation9], %s5091_s25, %s5091_s25, %s5092_s5  }
  0x31   :  { %s4808_s27 = scalar_lea.hbm %s5945_s13, 1024 }
  0x32   :  { %p4809_p2 = scmp.ne.s32.totalorder %s5945_s13, %s4808_s27  ;;  %p4812_p3 = scmp.lt.u32.totalorder %s4808_s27, %s5945_s13 }
  0x34   :  { %p4814_p4 = pnand %p4812_p3, %p4809_p2 }
  0x36   :  { %4817 = shalt.err (!%p4814_p4)
}
  0x37   :  { %s4818_s4 = scalar_lea.vmem %s114_s26, 1024  ;;  %p4823_p6 = scmp.lt.s32.totalorder %s114_s26, %s114_s26 }
  0x38   :  { %p4819_p5 = scmp.ne.s32.totalorder %s114_s26, %s4818_s4  ;;  %p4824_p7 = scmp.lt.s32.totalorder %s4818_s4, %s4818_s4 }
  0x3a   :  { %p4825_p8 = por %p4824_p7, %p4823_p6 }
  0x3c   :  { %p4826_p9 = pnand %p4825_p8, %p4819_p5 }
  0x3e   :  { %4829 = shalt.err (!%p4826_p9)
}
  0x3f   :  { %119 = dma.hbm_to_vmem [thread:$0]  %s5945_s13, 1024, %s114_s26, [#allocation12], %s5091_s25, %s5091_s25, %s5092_s5  }
  0x40   :  { %s5093_s30 = smov [#allocation14]   ;;  %s5094_s22 = smov [#allocation17]  }
  0x41   :  { %s137_s8 = sshll.u32 %s5093_s30, 4  ;;  %s161_s23 = sshll.u32 %s5094_s22, 4  ;;  %s138_s8 = int_to_ptr.vmem [resolvable:$true] %s137_s8  ;;  %s162_s23 = int_to_ptr.vmem [resolvable:$true] %s161_s23 }
  0x42   :  { %s4830_s27 = scalar_lea.hbm %s5947_s15, 3072 }
  0x43   :  { %p4831_p10 = scmp.ne.s32.totalorder %s5947_s15, %s4830_s27  ;;  %p4834_p11 = scmp.lt.u32.totalorder %s4830_s27, %s5947_s15 }
  0x45   :  { %p4836_p12 = pnand %p4834_p11, %p4831_p10 }
  0x47   :  { %4839 = shalt.err (!%p4836_p12)
}
  0x48   :  { %s4840_s13 = scalar_lea.vmem %s138_s8, 3072  ;;  %p4845_p0 = scmp.lt.s32.totalorder %s138_s8, %s138_s8 }
  0x49   :  { %p4841_p13 = scmp.ne.s32.totalorder %s138_s8, %s4840_s13  ;;  %p4846_p1 = scmp.lt.s32.totalorder %s4840_s13, %s4840_s13 }
  0x4b   :  { %p4847_p2 = por %p4846_p1, %p4845_p0 }
  0x4d   :  { %p4848_p3 = pnand %p4847_p2, %p4841_p13 }
  0x4f   :  { %4851 = shalt.err (!%p4848_p3)
}
  0x50   :  { %143 = dma.hbm_to_vmem [thread:$0]  %s5947_s15, 3072, %s138_s8, [#allocation15], %s5091_s25, %s5091_s25, %s5092_s5  }
  0x51   :  { %s4852_s30 = scalar_lea.hbm %s5949_s17, 3072 }
  0x52   :  { %p4853_p4 = scmp.ne.s32.totalorder %s5949_s17, %s4852_s30  ;;  %p4856_p5 = scmp.lt.u32.totalorder %s4852_s30, %s5949_s17 }
  0x54   :  { %p4858_p6 = pnand %p4856_p5, %p4853_p4 }
  0x56   :  { %4861 = shalt.err (!%p4858_p6)
}
  0x57   :  { %s4862_s3 = scalar_lea.vmem %s162_s23, 3072  ;;  %p4867_p8 = scmp.lt.s32.totalorder %s162_s23, %s162_s23 }
  0x58   :  { %p4863_p7 = scmp.ne.s32.totalorder %s162_s23, %s4862_s3  ;;  %p4868_p9 = scmp.lt.s32.totalorder %s4862_s3, %s4862_s3 }
  0x5a   :  { %p4869_p10 = por %p4868_p9, %p4867_p8 }
  0x5c   :  { %p4870_p11 = pnand %p4869_p10, %p4863_p7 }
  0x5e   :  { %4873 = shalt.err (!%p4870_p11)
}
  0x5f   :  { %167 = dma.hbm_to_vmem [thread:$0]  %s5949_s17, 3072, %s162_s23, [#allocation18], %s5091_s25, %s5091_s25, %s5092_s5  }
  0x60   :  { %s5095_s28 = smov [#allocation20]   ;;  %s5096_s0 = smov [#allocation2]  }
  0x61   :  { %s185_s29 = sshll.u32 %s5095_s28, 4  ;;  %s51_s13 = sshll.u32 %s5096_s0, 4  ;;  %s186_s29 = int_to_ptr.vmem [resolvable:$true] %s185_s29  ;;  %s52_s13 = int_to_ptr.vmem [resolvable:$true] %s51_s13 }
  0x62   :  { %s4874_s10 = scalar_lea.hbm %s5951_s19, 1024 }
  0x63   :  { %p4875_p12 = scmp.ne.s32.totalorder %s5951_s19, %s4874_s10  ;;  %p4878_p13 = scmp.lt.u32.totalorder %s4874_s10, %s5951_s19 }
  0x65   :  { %p4880_p0 = pnand %p4878_p13, %p4875_p12 }
  0x67   :  { %4883 = shalt.err (!%p4880_p0)
}
  0x68   :  { %s4884_s17 = scalar_lea.vmem %s186_s29, 1024  ;;  %p4889_p2 = scmp.lt.s32.totalorder %s186_s29, %s186_s29 }
  0x69   :  { %p4885_p1 = scmp.ne.s32.totalorder %s186_s29, %s4884_s17  ;;  %p4890_p3 = scmp.lt.s32.totalorder %s4884_s17, %s4884_s17 }
  0x6b   :  { %p4891_p4 = por %p4890_p3, %p4889_p2 }
  0x6d   :  { %p4892_p5 = pnand %p4891_p4, %p4885_p1 }
  0x6f   :  { %4895 = shalt.err (!%p4892_p5)
}
  0x70   :  { %191 = dma.hbm_to_vmem [thread:$0]  %s5951_s19, 1024, %s186_s29, [#allocation21], %s5091_s25, %s5091_s25, %s5092_s5  }
  0x71   :  { %s4896_s15 = scalar_lea.hbm %s5938_s6, 96 }
  0x72   :  { %p4897_p6 = scmp.ne.s32.totalorder %s5938_s6, %s4896_s15  ;;  %p4900_p7 = scmp.lt.u32.totalorder %s4896_s15, %s5938_s6 }
  0x74   :  { %p4902_p8 = pnand %p4900_p7, %p4897_p6 }
  0x76   :  { %4905 = shalt.err (!%p4902_p8)
}
  0x77   :  { %s4906_s4 = scalar_lea.vmem %s52_s13, 96  ;;  %p4911_p10 = scmp.lt.s32.totalorder %s52_s13, %s52_s13 }
  0x78   :  { %p4907_p9 = scmp.ne.s32.totalorder %s52_s13, %s4906_s4  ;;  %p4912_p11 = scmp.lt.s32.totalorder %s4906_s4, %s4906_s4 }
  0x7a   :  { %p4913_p12 = por %p4912_p11, %p4911_p10 }
  0x7c   :  { %p4914_p13 = pnand %p4913_p12, %p4907_p9 }
  0x7e   :  { %4917 = shalt.err (!%p4914_p13)
}
  0x7f   :  { %s5097_s19 = smov 16   ;;  %s5098_s29 = smov 1  }
  0x80   :  { %57 = dma.hbm_to_vmem [thread:$0]  %s5938_s6, 96, %s52_s13, [#allocation3], %s5097_s19, %s5097_s19, %s5098_s29  }
  0x81   :  { %s5099_s30 = smov [#allocation7]   ;;  %s5100_s1 = smov [#allocation10]  }
  0x82   :  { %s75_s22 = sshll.u32 %s5099_s30, 4  ;;  %s99_s17 = sshll.u32 %s5100_s1, 4  ;;  %s76_s22 = int_to_ptr.vmem [resolvable:$true] %s75_s22  ;;  %s100_s17 = int_to_ptr.vmem [resolvable:$true] %s99_s17 }
  0x83   :  { %s4918_s27 = scalar_lea.hbm %s5941_s9, 3072 }
  0x84   :  { %p4919_p0 = scmp.ne.s32.totalorder %s5941_s9, %s4918_s27  ;;  %p4922_p1 = scmp.lt.u32.totalorder %s4918_s27, %s5941_s9 }
  0x86   :  { %p4924_p2 = pnand %p4922_p1, %p4919_p0 }
  0x88   :  { %4927 = shalt.err (!%p4924_p2)
}
  0x89   :  { %s4928_s6 = scalar_lea.vmem %s76_s22, 3072  ;;  %p4933_p4 = scmp.lt.s32.totalorder %s76_s22, %s76_s22 }
  0x8a   :  { %p4929_p3 = scmp.ne.s32.totalorder %s76_s22, %s4928_s6  ;;  %p4934_p5 = scmp.lt.s32.totalorder %s4928_s6, %s4928_s6 }
  0x8c   :  { %p4935_p6 = por %p4934_p5, %p4933_p4 }
  0x8e   :  { %p4936_p7 = pnand %p4935_p6, %p4929_p3 }
  0x90   :  { %4939 = shalt.err (!%p4936_p7)
}
  0x91   :  { %81 = dma.hbm_to_vmem [thread:$0]  %s5941_s9, 3072, %s76_s22, [#allocation6], %s5091_s25, %s5091_s25, %s5092_s5  }
  0x92   :  { %s4940_s19 = scalar_lea.hbm %s5943_s11, 3072 }
  0x93   :  { %p4941_p8 = scmp.ne.s32.totalorder %s5943_s11, %s4940_s19  ;;  %p4944_p9 = scmp.lt.u32.totalorder %s4940_s19, %s5943_s11 }
  0x95   :  { %p4946_p10 = pnand %p4944_p9, %p4941_p8 }
  0x97   :  { %4949 = shalt.err (!%p4946_p10)
}
  0x98   :  { %s4950_s1 = scalar_lea.vmem %s100_s17, 3072  ;;  %p4955_p12 = scmp.lt.s32.totalorder %s100_s17, %s100_s17 }
  0x99   :  { %p4951_p11 = scmp.ne.s32.totalorder %s100_s17, %s4950_s1  ;;  %p4956_p13 = scmp.lt.s32.totalorder %s4950_s1, %s4950_s1 }
  0x9b   :  { %p4957_p0 = por %p4956_p13, %p4955_p12 }
  0x9d   :  { %p4958_p1 = pnand %p4957_p0, %p4951_p11 }
  0x9f   :  { %4961 = shalt.err (!%p4958_p1)
}
  0xa0   :  { %105 = dma.hbm_to_vmem [thread:$0]  %s5943_s11, 3072, %s100_s17, [#allocation9], %s5091_s25, %s5091_s25, %s5092_s5  }
  0xa1   :  { %s5101_s23 = smov [#allocation13]   ;;  %s5102_s27 = smov [#allocation16]  }
  0xa2   :  { %s125_s2 = sshll.u32 %s5101_s23, 4  ;;  %s149_s3 = sshll.u32 %s5102_s27, 4  ;;  %s126_s2 = int_to_ptr.vmem [resolvable:$true] %s125_s2  ;;  %s150_s3 = int_to_ptr.vmem [resolvable:$true] %s149_s3 }
  0xa3   :  { %s4962_s28 = scalar_lea.hbm %s5946_s14, 1024 }
  0xa4   :  { %p4963_p2 = scmp.ne.s32.totalorder %s5946_s14, %s4962_s28  ;;  %p4966_p3 = scmp.lt.u32.totalorder %s4962_s28, %s5946_s14 }
  0xa6   :  { %p4968_p4 = pnand %p4966_p3, %p4963_p2 }
  0xa8   :  { %4971 = shalt.err (!%p4968_p4)
}
  0xa9   :  { %s4972_s11 = scalar_lea.vmem %s126_s2, 1024  ;;  %p4977_p6 = scmp.lt.s32.totalorder %s126_s2, %s126_s2 }
  0xaa   :  { %p4973_p5 = scmp.ne.s32.totalorder %s126_s2, %s4972_s11  ;;  %p4978_p7 = scmp.lt.s32.totalorder %s4972_s11, %s4972_s11 }
  0xac   :  { %p4979_p8 = por %p4978_p7, %p4977_p6 }
  0xae   :  { %p4980_p9 = pnand %p4979_p8, %p4973_p5 }
  0xb0   :  { %4983 = shalt.err (!%p4980_p9)
}
  0xb1   :  { %131 = dma.hbm_to_vmem [thread:$0]  %s5946_s14, 1024, %s126_s2, [#allocation12], %s5091_s25, %s5091_s25, %s5092_s5  }
  0xb2   :  { %s4984_s10 = scalar_lea.hbm %s5948_s16, 3072 }
  0xb3   :  { %p4985_p10 = scmp.ne.s32.totalorder %s5948_s16, %s4984_s10  ;;  %p4988_p11 = scmp.lt.u32.totalorder %s4984_s10, %s5948_s16 }
  0xb5   :  { %p4990_p12 = pnand %p4988_p11, %p4985_p10 }
  0xb7   :  { %4993 = shalt.err (!%p4990_p12)
}
  0xb8   :  { %s4994_s22 = scalar_lea.vmem %s150_s3, 3072  ;;  %p4999_p0 = scmp.lt.s32.totalorder %s150_s3, %s150_s3 }
  0xb9   :  { %p4995_p13 = scmp.ne.s32.totalorder %s150_s3, %s4994_s22  ;;  %p5000_p1 = scmp.lt.s32.totalorder %s4994_s22, %s4994_s22 }
  0xbb   :  { %p5001_p2 = por %p5000_p1, %p4999_p0 }
  0xbd   :  { %p5002_p3 = pnand %p5001_p2, %p4995_p13 }
  0xbf   :  { %5005 = shalt.err (!%p5002_p3)
}
  0xc0   :  { %155 = dma.hbm_to_vmem [thread:$0]  %s5948_s16, 3072, %s150_s3, [#allocation15], %s5091_s25, %s5091_s25, %s5092_s5  }
  0xc1   :  { %s5103_s2 = smov [#allocation19]   ;;  %s5104_s15 = smov [#allocation22]  }
  0xc2   :  { %s173_s27 = sshll.u32 %s5103_s2, 4  ;;  %s197_s8 = sshll.u32 %s5104_s15, 4  ;;  %s174_s27 = int_to_ptr.vmem [resolvable:$true] %s173_s27  ;;  %s198_s8 = int_to_ptr.vmem [resolvable:$true] %s197_s8 }
  0xc3   :  { %s5006_s13 = scalar_lea.hbm %s5950_s18, 2048 }
  0xc4   :  { %p5007_p4 = scmp.ne.s32.totalorder %s5950_s18, %s5006_s13  ;;  %p5010_p5 = scmp.lt.u32.totalorder %s5006_s13, %s5950_s18 }
  0xc6   :  { %p5012_p6 = pnand %p5010_p5, %p5007_p4 }
  0xc8   :  { %5015 = shalt.err (!%p5012_p6)
}
  0xc9   :  { %s5016_s16 = scalar_lea.vmem %s174_s27, 2048  ;;  %p5021_p8 = scmp.lt.s32.totalorder %s174_s27, %s174_s27 }
  0xca   :  { %p5017_p7 = scmp.ne.s32.totalorder %s174_s27, %s5016_s16  ;;  %p5022_p9 = scmp.lt.s32.totalorder %s5016_s16, %s5016_s16 }
  0xcc   :  { %p5023_p10 = por %p5022_p9, %p5021_p8 }
  0xce   :  { %p5024_p11 = pnand %p5023_p10, %p5017_p7 }
  0xd0   :  { %5027 = shalt.err (!%p5024_p11)
}
  0xd1   :  { %179 = dma.hbm_to_vmem [thread:$0]  %s5950_s18, 2048, %s174_s27, [#allocation18], %s5091_s25, %s5091_s25, %s5092_s5  }
  0xd2   :  { %s5028_s10 = scalar_lea.hbm %s5952_s20, 1024 }
  0xd3   :  { %p5029_p12 = scmp.ne.s32.totalorder %s5952_s20, %s5028_s10  ;;  %p5032_p13 = scmp.lt.u32.totalorder %s5028_s10, %s5952_s20 }
  0xd5   :  { %p5034_p0 = pnand %p5032_p13, %p5029_p12 }
  0xd7   :  { %5037 = shalt.err (!%p5034_p0)
}
  0xd8   :  { %s5038_s22 = scalar_lea.vmem %s198_s8, 1024  ;;  %p5043_p2 = scmp.lt.s32.totalorder %s198_s8, %s198_s8 }
  0xd9   :  { %p5039_p1 = scmp.ne.s32.totalorder %s198_s8, %s5038_s22  ;;  %p5044_p3 = scmp.lt.s32.totalorder %s5038_s22, %s5038_s22 }
  0xdb   :  { %p5045_p4 = por %p5044_p3, %p5043_p2 }
  0xdd   :  { %p5046_p5 = pnand %p5045_p4, %p5039_p1 }
  0xdf   :  { %5049 = shalt.err (!%p5046_p5)
}
  0xe0   :  { %203 = dma.hbm_to_vmem [thread:$0]  %s5952_s20, 1024, %s198_s8, [#allocation21], %s5091_s25, %s5091_s25, %s5092_s5  }
  0xe1   :  { %5072 = dma.done.wait [#allocation3], 96  }
  0xe2   :  { %5073 = vsyncadd [#allocation3], 4294967200 }
  0xe3   :  { %5074 = dma.done.wait [#allocation6], 3088  }
  0xe4   :  { %5075 = vsyncadd [#allocation6], 4294964208 }
  0xe5   :  { %5076 = dma.done.wait [#allocation9], 6144  }
  0xe6   :  { %5077 = vsyncadd [#allocation9], 4294961152 }
  0xe7   :  { %5078 = dma.done.wait [#allocation12], 2048  }
  0xe8   :  { %5079 = vsyncadd [#allocation12], 4294965248 }
  0xe9   :  { %5080 = dma.done.wait [#allocation15], 6144  }
  0xea   :  { %5081 = vsyncadd [#allocation15], 4294961152 }
  0xeb   :  { %5082 = dma.done.wait [#allocation18], 5120  }
  0xec   :  { %5083 = vsyncadd [#allocation18], 4294962176 }
  0xed   :  { %5084 = dma.done.wait [#allocation21], 2048  }
  0xee   :  { %5085 = vsyncadd [#allocation21], 4294965248  ;;  %vm334_vm0 = vcmask 1041408   ;;  %s5964_s27 = sld [smem:[#allocation33_spill]]  ;;  %s5965_s5 = sld [smem:[#allocation32_spill]]  ;;  %vm327_vm1 = vcmask 31744   ;;  %v244_v34 = vlaneseq }
  0xef   :  { %v4548_v8 = vld [vmem:[#allocation7 + $0x80] sm:$0xff]   ;;  %v4551_v11 = vld [vmem:[#allocation7 + $0x88] sm:$0xff]   ;;  %v4554_v14 = vld [vmem:[#allocation7 + $0x90] sm:$0xff]   ;;  %s5966_s17 = sld [smem:[#allocation34_spill]]  ;;  %vm5105_vm7 = vmmov 1   ;;  %s5975_s4 = sld [smem:[#allocation35_spill]] }
  0xf0   :  { %v4549_v9 = vld [vmem:[#allocation7 + $0x40] sm:$0xff]   ;;  %v4552_v12 = vld [vmem:[#allocation7 + $0x48] sm:$0xff]   ;;  %v4555_v15 = vld [vmem:[#allocation7 + $0x50] sm:$0xff]   ;;  %v5423_v35 = vshrl.u32 %v244_v34, 7  ;;  %s5976_s10 = sld [smem:[#allocation36_spill]]  ;;  %s5977_s1 = sld [smem:[#allocation37_spill]] }
  0xf1   :  { %v4550_v10 = vld [vmem:[#allocation7] sm:$0xff]   ;;  %3967 = vmatprep.subr.bf16.mxu1 %v4549_v9  ;;  %v4553_v13 = vld [vmem:[#allocation7 + $0x8] sm:$0xff]   ;;  %v4556_v16 = vld [vmem:[#allocation7 + $0x10] sm:$0xff]  }
  0xf2   :  { %3968 = vmatpush3.bf16.msra.mxu1 %v4550_v10  ;;  %v4557_v17 = vld [vmem:[#allocation7 + $0x98] sm:$0xff]   ;;  %v4560_v20 = vld [vmem:[#allocation7 + $0xa0] sm:$0xff]   ;;  %v4563_v23 = vld [vmem:[#allocation7 + $0xa8] sm:$0xff]   ;;  %v247_v37 = vadd.s32 16, %v5423_v35  ;;  %v5430_v39 = vand.u32 15, %v5423_v35  ;;  %vm393_vm2 = vcmp.lt.s32.totalorder %v5423_v35, 2 }
  0xf3   :  { %3969 = vmatprep.subr.bf16.mxu1 %v4552_v12  ;;  %v4558_v18 = vld [vmem:[#allocation7 + $0x58] sm:$0xff]   ;;  %v4561_v21 = vld [vmem:[#allocation7 + $0x60] sm:$0xff]   ;;  %v4564_v24 = vld [vmem:[#allocation7 + $0x68] sm:$0xff]   ;;  %vm406_vm3 = vcmp.lt.s32.totalorder %v5423_v35, 1  ;;  %vm1099_vm13 = vcmp.lt.s32.totalorder %v5423_v35, 4 }
  0xf4   :  { %v319_v0 = vld [vmem:[%s5964_s27] sm:$0x3]  ;;  %v314_v2 = vld [vmem:[%s5965_s5 + $0x8] sm:$0xff]  ;;  %v315_v5 = vld [vmem:[%s5965_s5 + $0x10] sm:$0xff]  ;;  %v5440_v46 = vand.u32 15, %v247_v37  ;;  %vm297_vm4 = vcmp.ge.s32.totalorder %v5430_v39, 1 }
  0xf5   :  { %v313_v1 = vld [vmem:[%s5965_s5] sm:$0xff]  ;;  %4526 = vmatprep.subr.msk.bf16.mxu0 %vm334_vm0, %v319_v0  ;;  %v336_v3 = vsel %vm334_vm0, %v319_v0, 0  ;;  %v316_v6 = vld [vmem:[%s5965_s5 + $0x18] sm:$0xff]  ;;  %v4562_v22 = vld [vmem:[#allocation7 + $0x20] sm:$0xff]   ;;  %vm301_vm5 = vcmp.ge.s32.totalorder %v5430_v39, 2  ;;  %vm305_vm14 = vcmp.ge.s32.totalorder %v5430_v39, 4 }
  0xf6   :  { %v317_v4 = vpack.c.bf16 %v314_v2, %v313_v1  ;;  %4301 = vmatpush3.bf16.msra.mxu0 %v336_v3  ;;  %v318_v7 = vpack.c.bf16 %v316_v6, %v315_v5  ;;  %3970 = vmatpush3.bf16.msra.mxu1 %v4553_v13  ;;  %v4559_v19 = vld [vmem:[#allocation7 + $0x18] sm:$0xff]   ;;  %v4565_v25 = vld [vmem:[#allocation7 + $0x28] sm:$0xff]   ;;  %v4566_v26 = vld [vmem:[#allocation7 + $0xb0] sm:$0xff]   ;;  %vm299_vm6 = vcmp.ge.s32.totalorder %v5440_v46, 1  ;;  %vm303_vm11 = vcmp.ge.s32.totalorder %v5440_v46, 2 }
  0xf7   :  { %4306 = vmatprep.subr.bf16.mxu0 %v4548_v8  ;;  %3971 = vmatprep.subr.bf16.mxu1 %v4555_v15  ;;  %v4567_v27 = vld [vmem:[#allocation7 + $0x70] sm:$0xff]   ;;  %v4569_v29 = vld [vmem:[#allocation7 + $0xb8] sm:$0xff]   ;;  %v4572_v32 = vld [vmem:[#allocation14 + $0x80] sm:$0xff]   ;;  %vm307_vm0 = vcmp.ge.s32.totalorder %v5440_v46, 4 }
  0xf8   :  { %4302 = vmatprep.mubr.msk.bf16.mxu0 %vm327_vm1, %v317_v4  ;;  %v4568_v28 = vld [vmem:[#allocation7 + $0x30] sm:$0xff]   ;;  %v4570_v30 = vld [vmem:[#allocation7 + $0x78] sm:$0xff]   ;;  %v4573_v33 = vld [vmem:[#allocation14 + $0x40] sm:$0xff]  }
  0xf9   :  { %4303 = vmatmul.mubr.msk.bf16.vlgmr.msra.gmra.mrb[0].mxu0 %vm327_vm1, %v318_v7  ;;  %v4571_v31 = vld [vmem:[#allocation7 + $0x38] sm:$0xff]   ;;  %v4574_v59 = vld [vmem:[#allocation14 + $0x88] sm:$0xff]   ;;  %vm5467_vm8 = vmpackc.low %vm5105_vm7, %vm297_vm4  ;;  %vm3622_vm4 = vcmask 50176  }
  0xfa   :  { %4307 = vmatpush3.bf16.msra.mxu0 %v4548_v8  ;;  %3972 = vmatpush3.bf16.msra.mxu1 %v4556_v16  ;;  %v3645_v36 = vld [vmem:[%s5966_s17] ss:$0 sm:$0xff]  ;;  %vm5480_vm9 = vmpackc.low %vm5105_vm7, %vm301_vm5  ;;  %v4576_v12 = vld [vmem:[#allocation14 + $0x48] sm:$0xff]  }
  0xfb   :  { %4308 = vmatprep.subr.bf16.mxu0 %v4551_v11  ;;  %3973 = vmatprep.subr.bf16.mxu1 %v4558_v18  ;;  %vm5485_vm10 = vmpackc.low %vm5105_vm7, %vm299_vm6  ;;  %v4577_v13 = vld [vmem:[#allocation14 + $0x90] sm:$0xff]   ;;  %v4580_v16 = vld [vmem:[#allocation14 + $0x98] sm:$0xff]  }
  0xfc   :  { %vm5502_vm12 = vmpackc.low %vm5105_vm7, %vm303_vm11  ;;  %v4579_v15 = vld [vmem:[#allocation14 + $0x50] sm:$0xff]   ;;  %v4582_v18 = vld [vmem:[#allocation14 + $0x58] sm:$0xff]  }
  0xfd   :  { %v4600_v61 = vld [vmem:[#allocation8 + $0x48] sm:$0xff]   ;;  %v4603_v4 = vld [vmem:[#allocation8 + $0x50] sm:$0xff]   ;;  %vm5586_vm15 = vmpackc.low %vm5105_vm7, %vm305_vm14 }
  0xfe   :  { %4309 = vmatpush3.bf16.msra.mxu0 %v4551_v11  ;;  %3974 = vmatpush3.bf16.msra.mxu1 %v4559_v19  ;;  %v4575_v11 = vld [vmem:[#allocation14] sm:$0xff]   ;;  %vm5606_vm1 = vmpackc.low %vm5105_vm7, %vm307_vm0  ;;  %v4624_v46 = vld [vmem:[#allocation16 + $0x48] sm:$0xff]  }
  0xff   :  { %4310 = vmatprep.subr.bf16.mxu0 %v4554_v14  ;;  %3975 = vmatprep.subr.bf16.mxu1 %v4561_v21  ;;  %v4583_v19 = vld [vmem:[#allocation14 + $0xa0] sm:$0xff]   ;;  %v4648_v2 = vld [vmem:[#allocation10 + $0x48] sm:$0xff]   ;;  %v4651_v9 = vld [vmem:[#allocation10 + $0x50] sm:$0xff]  }
 0x100   :  { %v4585_v21 = vld [vmem:[#allocation14 + $0x60] sm:$0xff]  }
 0x101   :  { %v4695_v35 = vld [vmem:[%s5944_s12 + $0x8] sm:$0xff]  }
 0x102   :  { %4311 = vmatpush3.bf16.msra.mxu0 %v4554_v14  ;;  %3976 = vmatpush3.bf16.msra.mxu1 %v4562_v22  ;;  %v4578_v14 = vld [vmem:[#allocation14 + $0x8] sm:$0xff]  }
 0x103   :  { %4312 = vmatprep.subr.bf16.mxu0 %v4557_v17  ;;  %3977 = vmatprep.subr.bf16.mxu1 %v4564_v24  ;;  %v4586_v22 = vld [vmem:[#allocation14 + $0xa8] sm:$0xff]  }
 0x104   :  { %v4588_v24 = vld [vmem:[#allocation14 + $0x68] sm:$0xff]  }
 0x106   :  { %4313 = vmatpush3.bf16.msra.mxu0 %v4557_v17  ;;  %3978 = vmatpush3.bf16.msra.mxu1 %v4565_v25  ;;  %v4581_v17 = vld [vmem:[#allocation14 + $0x10] sm:$0xff]  }
 0x107   :  { %4314 = vmatprep.subr.bf16.mxu0 %v4560_v20  ;;  %3979 = vmatprep.subr.bf16.mxu1 %v4567_v27  ;;  %v4589_v25 = vld [vmem:[#allocation14 + $0xb0] sm:$0xff]  }
 0x108   :  { %v4591_v27 = vld [vmem:[#allocation14 + $0x70] sm:$0xff]  }
 0x10a   :  { %4315 = vmatpush3.bf16.msra.mxu0 %v4560_v20  ;;  %3980 = vmatpush3.bf16.msra.mxu1 %v4568_v28  ;;  %v4584_v20 = vld [vmem:[#allocation14 + $0x18] sm:$0xff]  }
 0x10b   :  { %4316 = vmatprep.subr.bf16.mxu0 %v4563_v23  ;;  %3981 = vmatprep.subr.bf16.mxu1 %v4570_v30  ;;  %v4592_v28 = vld [vmem:[#allocation14 + $0xb8] sm:$0xff]  }
 0x10c   :  { %v4594_v30 = vld [vmem:[#allocation14 + $0x78] sm:$0xff]  }
 0x10e   :  { %4317 = vmatpush3.bf16.msra.mxu0 %v4563_v23  ;;  %3982 = vmatpush3.bf16.msra.mxu1 %v4571_v31  ;;  %v4587_v23 = vld [vmem:[#allocation14 + $0x20] sm:$0xff]   ;;  %v4595_v31 = vld [vmem:[#allocation14 + $0x38] sm:$0xff]  }
 0x10f   :  { %4318 = vmatprep.subr.bf16.mxu0 %v4566_v26  ;;  %4005 = vmatprep.subr.bf16.mxu1 %v4573_v33 }
 0x112   :  { %4319 = vmatpush3.bf16.msra.mxu0 %v4566_v26  ;;  %v4590_v26 = vld [vmem:[#allocation14 + $0x28] sm:$0xff]  }
 0x113   :  { %4320 = vmatprep.subr.bf16.mxu0 %v4569_v29 }
 0x116   :  { %4321 = vmatpush3.bf16.msra.mxu0 %v4569_v29  ;;  %v4593_v29 = vld [vmem:[#allocation14 + $0x30] sm:$0xff]  }
 0x117   :  { %4326 = vmatprep.subr.bf16.mxu0 %v4572_v32 }
 0x1cc   :  { %v4304_v38 = vpop.f32.mrb[0].mxu0 }
 0x1cd   :  { %v372_v40 = vpop.f32.mrb[1].mxu0  ;;  %v5432_v41 = vadd.f32 %v4304_v38, %v3645_v36 }
 0x1ce   :  { %v5434_v42 = vadd.f32 %v3645_v36, %v372_v40  ;;  %v4305_v43 = vpop.f32.mrb[2].mxu0 }
 0x1cf   :  { %v5436_v44 = vadd.f32 %v4305_v43, %v3645_v36  ;;  %v375_v45 = vpop.f32.mrb[3].mxu0  ;;  %v404_v52 = vrot.slane %v5432_v41, 7  ;;  %v391_v6 = vrot.slane %v5432_v41, 6 }
 0x1d0   :  { %v389_v47 = vrot.slane %v5434_v42, 6  ;;  %v5443_v48 = vadd.f32 %v3645_v36, %v375_v45  ;;  %v402_v49 = vrot.slane %v5434_v42, 7  ;;  %v3684_v45 = vld [vmem:[%s5975_s4] ss:$0 sm:$0xff] }
 0x1d1   :  { %v392_v50 = vrot.slane %v5436_v44, 6  ;;  %v405_v51 = vrot.slane %v5436_v44, 7  ;;  %v420_v56 = vpack.c.bf16 %v5436_v44, %v5432_v41 }
 0x1d2   :  { %v390_v53 = vrot.slane %v5443_v48, 6  ;;  %v417_v54 = vpack.c.bf16 %v5443_v48, %v5434_v42  ;;  %v403_v55 = vrot.slane %v5443_v48, 7 }
 0x1d3   :  { %v410_v57 = vsel %vm406_vm3, %v405_v51, %v402_v49  ;;  %v397_v58 = vsel %vm393_vm2, %v392_v50, %v389_v47  ;;  %v407_v63 = vsel %vm406_vm3, %v404_v52, %v405_v51  ;;  %v394_v7 = vsel %vm393_vm2, %v391_v6, %v392_v50  ;;  %v3685_v51 = vld [vmem:[%s5976_s10] ss:$0 sm:$0xff] }
 0x1d4   :  { %4322 = vmatprep.mubr.bf16.mxu0 %v417_v54  ;;  %v409_v60 = vsel %vm406_vm3, %v402_v49, %v403_v55  ;;  %v396_v62 = vsel %vm393_vm2, %v389_v47, %v390_v53  ;;  %v408_v0 = vsel %vm406_vm3, %v403_v55, %v404_v52  ;;  %v395_v8 = vsel %vm393_vm2, %v390_v53, %v391_v6 }
 0x1d5   :  { %4323 = vmatmul.mubr.bf16.vlgmr.msra.gmra.mrb[4].mxu0 %v420_v56  ;;  %v3673_v1 = vpack.c.bf16 %v409_v60, %v410_v57  ;;  %v3676_v3 = vpack.c.bf16 %v396_v62, %v397_v58  ;;  %v3679_v5 = vpack.c.bf16 %v407_v63, %v408_v0  ;;  %v3682_v10 = vpack.c.bf16 %v394_v7, %v395_v8 }
 0x1d6   :  { %4327 = vmatpush3.bf16.msra.mxu0 %v4572_v32 }
 0x1d7   :  { %3674 = vmatprep.mubr.msk.bf16.mxu1 %vm5467_vm8, %v3673_v1  ;;  %4328 = vmatprep.subr.bf16.mxu0 %v4574_v59 }
 0x1d8   :  { %3677 = vmatmul.mubr.msk.bf16.vlgmr.msra.gmra.mrb[0].mxu1 %vm5480_vm9, %v3676_v3 }
 0x1d9   :  { %3680 = vmatprep.mubr.msk.bf16.mxu1 %vm5485_vm10, %v3679_v5  ;;  %4006 = vmatpush3.bf16.msra.mxu1 %v4575_v11 }
 0x1da   :  { %4329 = vmatpush3.bf16.msra.mxu0 %v4574_v59  ;;  %4007 = vmatprep.subr.bf16.mxu1 %v4576_v12 }
 0x1db   :  { %4330 = vmatprep.subr.bf16.mxu0 %v4577_v13 }
 0x1dd   :  { %4008 = vmatpush3.bf16.msra.mxu1 %v4578_v14 }
 0x1de   :  { %4331 = vmatpush3.bf16.msra.mxu0 %v4577_v13  ;;  %4009 = vmatprep.subr.bf16.mxu1 %v4579_v15 }
 0x1df   :  { %4332 = vmatprep.subr.bf16.mxu0 %v4580_v16 }
 0x1e0   :  { %3683 = vmatmul.mubr.msk.bf16.gmra.mrb[4].mxu1 %vm5502_vm12, %v3682_v10 }
 0x1e1   :  { %4010 = vmatpush3.bf16.msra.mxu1 %v4581_v17 }
 0x1e2   :  { %4333 = vmatpush3.bf16.msra.mxu0 %v4580_v16  ;;  %4011 = vmatprep.subr.bf16.mxu1 %v4582_v18 }
 0x1e3   :  { %4334 = vmatprep.subr.bf16.mxu0 %v4583_v19 }
 0x1e5   :  { %4012 = vmatpush3.bf16.msra.mxu1 %v4584_v20 }
 0x1e6   :  { %4335 = vmatpush3.bf16.msra.mxu0 %v4583_v19  ;;  %4013 = vmatprep.subr.bf16.mxu1 %v4585_v21 }
 0x1e7   :  { %4336 = vmatprep.subr.bf16.mxu0 %v4586_v22 }
 0x1e9   :  { %4014 = vmatpush3.bf16.msra.mxu1 %v4587_v23 }
 0x1ea   :  { %4337 = vmatpush3.bf16.msra.mxu0 %v4586_v22  ;;  %4015 = vmatprep.subr.bf16.mxu1 %v4588_v24 }
 0x1eb   :  { %4338 = vmatprep.subr.bf16.mxu0 %v4589_v25 }
 0x1ed   :  { %4016 = vmatpush3.bf16.msra.mxu1 %v4590_v26 }
 0x1ee   :  { %4339 = vmatpush3.bf16.msra.mxu0 %v4589_v25  ;;  %4017 = vmatprep.subr.bf16.mxu1 %v4591_v27 }
 0x1ef   :  { %4340 = vmatprep.subr.bf16.mxu0 %v4592_v28 }
 0x1f1   :  { %4018 = vmatpush3.bf16.msra.mxu1 %v4593_v29 }
 0x1f2   :  { %4341 = vmatpush3.bf16.msra.mxu0 %v4592_v28  ;;  %4019 = vmatprep.subr.bf16.mxu1 %v4594_v30 }
 0x1f5   :  { %4020 = vmatpush3.bf16.msra.mxu1 %v4595_v31 }
 0x2a8   :  { %v4324_v32 = vpop.f32.mrb[4].mxu0 }
 0x2a9   :  { %v696_v33 = vpop.f32.mrb[5].mxu0 }
 0x2aa   :  { %v4325_v34 = vpop.f32.mrb[6].mxu0 }
 0x2ab   :  { %v3983_v36 = vpop.f32.mrb[0].mxu1  ;;  %v699_v37 = vpop.f32.mrb[7].mxu0 }
 0x2ac   :  { %v3984_v38 = vpop.f32.mrb[1].mxu1 }
 0x2ad   :  { %v3985_v40 = vadd.f32 %v3984_v38, %v3983_v36  ;;  %v3986_v43 = vpop.f32.mrb[2].mxu1  ;;  %v4596_v36 = vld [vmem:[#allocation8 + $0x80] sm:$0xff]   ;;  %v4598_v38 = vld [vmem:[#allocation8 + $0x88] sm:$0xff]  }
 0x2ae   :  { %v3987_v47 = vpop.f32.mrb[3].mxu1  ;;  %4346 = vmatprep.subr.bf16.mxu0 %v4596_v36 }
 0x2af   :  { %v697_v49 = vadd.f32 %v3985_v40, %v696_v33  ;;  %v3988_v50 = vadd.f32 %v3987_v47, %v3986_v43  ;;  %v4599_v40 = vld [vmem:[#allocation8] sm:$0xff]   ;;  %v4601_v43 = vld [vmem:[#allocation8 + $0x90] sm:$0xff]   ;;  %v4604_v47 = vld [vmem:[#allocation8 + $0x98] sm:$0xff]  }
 0x2b1   :  { %v717_v52 = vmul.f32 %v3684_v45, %v697_v49  ;;  %v700_v53 = vadd.f32 %v3988_v50, %v699_v37  ;;  %v4597_v37 = vld [vmem:[#allocation8 + $0x40] sm:$0xff]   ;;  %v4605_v49 = vld [vmem:[#allocation8 + $0x10] sm:$0xff]   ;;  %v4606_v50 = vld [vmem:[#allocation8 + $0x58] sm:$0xff]  }
 0x2b2   :  { %4043 = vmatprep.subr.bf16.mxu1 %v4597_v37 }
 0x2b3   :  { %v727_v54 = vadd.f32 %v3685_v51, %v717_v52  ;;  %v718_v55 = vmul.f32 %v3684_v45, %v700_v53  ;;  %v3989_v56 = vpop.f32.mrb[4].mxu1  ;;  %v4608_v52 = vld [vmem:[#allocation8 + $0x18] sm:$0xff]   ;;  %v4609_v53 = vld [vmem:[#allocation8 + $0x60] sm:$0xff]  }
 0x2b4   :  { %v3990_v57 = vpop.f32.mrb[5].mxu1 }
 0x2b5   :  { %v731_v58 = vmax.f32 %v727_v54, 0.0  ;;  %v728_v59 = vadd.f32 %v3685_v51, %v718_v55  ;;  %v3991_v60 = vadd.f32 %v3990_v57, %v3989_v56  ;;  %v3992_v62 = vpop.f32.mrb[6].mxu1  ;;  %v4610_v54 = vld [vmem:[#allocation8 + $0xa8] sm:$0xff]   ;;  %v4611_v55 = vld [vmem:[#allocation8 + $0x20] sm:$0xff]   ;;  %v4613_v57 = vld [vmem:[#allocation8 + $0xb0] sm:$0xff]  }
 0x2b6   :  { %v3993_v63 = vpop.f32.mrb[7].mxu1  ;;  %v4612_v56 = vld [vmem:[#allocation8 + $0x68] sm:$0xff]  }
 0x2b7   :  { %v732_v0 = vmax.f32 %v728_v59, 0.0  ;;  %v705_v1 = vadd.f32 %v4324_v32, %v3991_v60  ;;  %v737_v3 = vrot.slane %v731_v58, 6  ;;  %v749_v5 = vrot.slane %v731_v58, 7  ;;  %v4615_v59 = vld [vmem:[#allocation8 + $0x70] sm:$0xff]   ;;  %v4616_v60 = vld [vmem:[#allocation8 + $0xb8] sm:$0xff]  }
 0x2b8   :  { %v3994_v6 = vadd.f32 %v3993_v63, %v3992_v62  ;;  %v4617_v62 = vld [vmem:[#allocation8 + $0x30] sm:$0xff]   ;;  %v4618_v63 = vld [vmem:[#allocation8 + $0x78] sm:$0xff]  }
 0x2b9   :  { %v738_v7 = vrot.slane %v732_v0, 6  ;;  %v750_v8 = vrot.slane %v732_v0, 7  ;;  %v719_v10 = vmul.f32 %v3684_v45, %v705_v1  ;;  %v763_v11 = vpack.c.bf16 %v732_v0, %v731_v58  ;;  %v4614_v58 = vld [vmem:[#allocation8 + $0x28] sm:$0xff]   ;;  %v4619_v0 = vld [vmem:[#allocation8 + $0x38] sm:$0xff]   ;;  %v5538_v1 = vld [vmem:[#allocation16 + $0x80] sm:$0xff]  }
 0x2ba   :  { %v708_v12 = vadd.f32 %v4325_v34, %v3994_v6 }
 0x2bb   :  { %v743_v13 = vsel %vm393_vm2, %v737_v3, %v738_v7  ;;  %v729_v14 = vadd.f32 %v3685_v51, %v719_v10  ;;  %4342 = vmatprep.mubr.bf16.mxu0 %v763_v11  ;;  %v755_v15 = vsel %vm406_vm3, %v749_v5, %v750_v8 }
 0x2bc   :  { %v720_v16 = vmul.f32 %v3684_v45, %v708_v12  ;;  %v4602_v45 = vld [vmem:[#allocation8 + $0x8] sm:$0xff]  }
 0x2bd   :  { %v733_v17 = vmax.f32 %v729_v14, 0.0 }
 0x2be   :  { %v730_v18 = vadd.f32 %v3685_v51, %v720_v16  ;;  %v4607_v51 = vld [vmem:[#allocation8 + $0xa0] sm:$0xff]  }
 0x2bf   :  { %v739_v19 = vrot.slane %v733_v17, 6  ;;  %v751_v20 = vrot.slane %v733_v17, 7 }
 0x2c0   :  { %v734_v21 = vmax.f32 %v730_v18, 0.0 }
 0x2c1   :  { %v754_v22 = vsel %vm406_vm3, %v750_v8, %v751_v20  ;;  %v742_v23 = vsel %vm393_vm2, %v738_v7, %v739_v19 }
 0x2c2   :  { %v740_v24 = vrot.slane %v734_v21, 6  ;;  %v752_v25 = vrot.slane %v734_v21, 7  ;;  %v766_v26 = vpack.c.bf16 %v734_v21, %v733_v17  ;;  %v3723_v17 = vld [vmem:[#allocation2] ss:$0 sm:$0xff] }
 0x2c4   :  { %v744_v27 = vsel %vm393_vm2, %v740_v24, %v737_v3  ;;  %4343 = vmatmul.mubr.bf16.vlgmr.msra.gmra.mrb[8].mxu0 %v766_v26  ;;  %v756_v28 = vsel %vm406_vm3, %v752_v25, %v749_v5  ;;  %v753_v29 = vsel %vm406_vm3, %v751_v20, %v752_v25  ;;  %v741_v30 = vsel %vm393_vm2, %v739_v19, %v740_v24 }
 0x2c5   :  { %v3714_v31 = vpack.c.bf16 %v743_v13, %v744_v27  ;;  %v3711_v32 = vpack.c.bf16 %v755_v15, %v756_v28  ;;  %v3717_v33 = vpack.c.bf16 %v753_v29, %v754_v22  ;;  %v3720_v34 = vpack.c.bf16 %v741_v30, %v742_v23  ;;  %4347 = vmatpush3.bf16.msra.mxu0 %v4596_v36  ;;  %v3722_v13 = vld [vmem:[%s5977_s1] ss:$0 sm:$0xff] }
 0x2c6   :  { %4348 = vmatprep.subr.bf16.mxu0 %v4598_v38  ;;  %vm3508_vm3 = vcmask 1040384  }
 0x2c7   :  { %3712 = vmatprep.mubr.msk.bf16.mxu1 %vm5467_vm8, %v3711_v32 }
 0x2c8   :  { %3715 = vmatmul.mubr.msk.bf16.vlgmr.msra.gmra.mrb[8].mxu1 %vm5480_vm9, %v3714_v31 }
 0x2c9   :  { %3718 = vmatprep.mubr.msk.bf16.mxu1 %vm5485_vm10, %v3717_v33  ;;  %4044 = vmatpush3.bf16.msra.mxu1 %v4599_v40 }
 0x2ca   :  { %4349 = vmatpush3.bf16.msra.mxu0 %v4598_v38  ;;  %4045 = vmatprep.subr.bf16.mxu1 %v4600_v61 }
 0x2cb   :  { %4350 = vmatprep.subr.bf16.mxu0 %v4601_v43 }
 0x2cd   :  { %4046 = vmatpush3.bf16.msra.mxu1 %v4602_v45 }
 0x2ce   :  { %4351 = vmatpush3.bf16.msra.mxu0 %v4601_v43  ;;  %4047 = vmatprep.subr.bf16.mxu1 %v4603_v4 }
 0x2cf   :  { %4352 = vmatprep.subr.bf16.mxu0 %v4604_v47 }
 0x2d0   :  { %3721 = vmatmul.mubr.msk.bf16.gmra.mrb[12].mxu1 %vm5502_vm12, %v3720_v34 }
 0x2d1   :  { %4048 = vmatpush3.bf16.msra.mxu1 %v4605_v49 }
 0x2d2   :  { %4353 = vmatpush3.bf16.msra.mxu0 %v4604_v47  ;;  %4049 = vmatprep.subr.bf16.mxu1 %v4606_v50 }
 0x2d3   :  { %4354 = vmatprep.subr.bf16.mxu0 %v4607_v51 }
 0x2d5   :  { %4050 = vmatpush3.bf16.msra.mxu1 %v4608_v52 }
 0x2d6   :  { %4355 = vmatpush3.bf16.msra.mxu0 %v4607_v51  ;;  %4051 = vmatprep.subr.bf16.mxu1 %v4609_v53 }
 0x2d7   :  { %4356 = vmatprep.subr.bf16.mxu0 %v4610_v54 }
 0x2d9   :  { %4052 = vmatpush3.bf16.msra.mxu1 %v4611_v55 }
 0x2da   :  { %4357 = vmatpush3.bf16.msra.mxu0 %v4610_v54  ;;  %4053 = vmatprep.subr.bf16.mxu1 %v4612_v56 }
 0x2db   :  { %4358 = vmatprep.subr.bf16.mxu0 %v4613_v57 }
 0x2dd   :  { %4054 = vmatpush3.bf16.msra.mxu1 %v4614_v58 }
 0x2de   :  { %4359 = vmatpush3.bf16.msra.mxu0 %v4613_v57  ;;  %4055 = vmatprep.subr.bf16.mxu1 %v4615_v59 }
 0x2df   :  { %4360 = vmatprep.subr.bf16.mxu0 %v4616_v60 }
 0x2e1   :  { %4056 = vmatpush3.bf16.msra.mxu1 %v4617_v62 }
 0x2e2   :  { %4361 = vmatpush3.bf16.msra.mxu0 %v4616_v60  ;;  %4057 = vmatprep.subr.bf16.mxu1 %v4618_v63  ;;  %v4697_v63 = vld [vmem:[%s5944_s12 + $0x10] sm:$0xff]  }
 0x2e3   :  { %4366 = vmatprep.subr.bf16.mxu0 %v5538_v1 }
 0x2e5   :  { %4058 = vmatpush3.bf16.msra.mxu1 %v4619_v0 }
 0x397   :  { %v4344_v3 = vpop.f32.mrb[8].mxu0 }
 0x398   :  { %v1042_v5 = vpop.f32.mrb[9].mxu0 }
 0x399   :  { %v4345_v6 = vpop.f32.mrb[10].mxu0 }
 0x39a   :  { %v1045_v7 = vpop.f32.mrb[11].mxu0 }
 0x39b   :  { %v4021_v8 = vpop.f32.mrb[8].mxu1 }
 0x39c   :  { %v4022_v10 = vpop.f32.mrb[9].mxu1 }
 0x39d   :  { %v4023_v11 = vadd.f32 %v4022_v10, %v4021_v8  ;;  %v4024_v12 = vpop.f32.mrb[10].mxu1  ;;  %v4698_v8 = vld [vmem:[%s5944_s12 + $0x58] sm:$0xff]  }
 0x39e   :  { %v4025_v14 = vpop.f32.mrb[11].mxu1 }
 0x39f   :  { %v1043_v15 = vadd.f32 %v4023_v11, %v1042_v5  ;;  %v4026_v16 = vadd.f32 %v4025_v14, %v4024_v12  ;;  %v4621_v11 = vld [vmem:[#allocation16 + $0x40] sm:$0xff]   ;;  %v4622_v12 = vld [vmem:[#allocation16 + $0x88] sm:$0xff]   ;;  %v4625_v14 = vld [vmem:[#allocation16 + $0x90] sm:$0xff]  }
 0x3a0   :  { %4081 = vmatprep.subr.bf16.mxu1 %v4621_v11 }
 0x3a1   :  { %v1063_v18 = vmul.f32 %v3722_v13, %v1043_v15  ;;  %v1046_v19 = vadd.f32 %v4026_v16, %v1045_v7  ;;  %v4626_v15 = vld [vmem:[#allocation16 + $0x8] sm:$0xff]   ;;  %v4627_v16 = vld [vmem:[#allocation16 + $0x50] sm:$0xff]  }
 0x3a3   :  { %v1073_v20 = vadd.f32 %v3723_v17, %v1063_v18  ;;  %v1064_v21 = vmul.f32 %v3722_v13, %v1046_v19  ;;  %v4027_v22 = vpop.f32.mrb[12].mxu1  ;;  %v4629_v18 = vld [vmem:[#allocation16 + $0x10] sm:$0xff]   ;;  %v4630_v19 = vld [vmem:[#allocation16 + $0x58] sm:$0xff]  }
 0x3a4   :  { %v4028_v23 = vpop.f32.mrb[13].mxu1 }
 0x3a5   :  { %v1077_v24 = vmax.f32 %v1073_v20, 0.0  ;;  %v1074_v25 = vadd.f32 %v3723_v17, %v1064_v21  ;;  %v4029_v26 = vadd.f32 %v4028_v23, %v4027_v22  ;;  %v4030_v27 = vpop.f32.mrb[14].mxu1  ;;  %v4631_v20 = vld [vmem:[#allocation16 + $0xa0] sm:$0xff]   ;;  %v4632_v21 = vld [vmem:[#allocation16 + $0x18] sm:$0xff]   ;;  %v4634_v23 = vld [vmem:[#allocation16 + $0xa8] sm:$0xff]  }
 0x3a6   :  { %v4031_v28 = vpop.f32.mrb[15].mxu1  ;;  %v4633_v22 = vld [vmem:[#allocation16 + $0x60] sm:$0xff]  }
 0x3a7   :  { %v1081_v29 = vadd.f32 %v1077_v24, %v5434_v42  ;;  %v1078_v30 = vmax.f32 %v1074_v25, 0.0  ;;  %v1051_v31 = vadd.f32 %v4344_v3, %v4029_v26  ;;  %v4032_v32 = vadd.f32 %v4031_v28, %v4030_v27  ;;  %v4635_v24 = vld [vmem:[#allocation16 + $0x20] sm:$0xff]   ;;  %v4636_v25 = vld [vmem:[#allocation16 + $0x68] sm:$0xff]   ;;  %v4637_v26 = vld [vmem:[#allocation16 + $0xb0] sm:$0xff]  }
 0x3a8   :  { %v4638_v27 = vld [vmem:[#allocation16 + $0x28] sm:$0xff]   ;;  %v4639_v28 = vld [vmem:[#allocation16 + $0x70] sm:$0xff]  }
 0x3a9   :  { %v5546_v33 = vadd.f32 %v1078_v30, %v5443_v48  ;;  %v1065_v34 = vmul.f32 %v3722_v13, %v1051_v31  ;;  %v1054_v36 = vadd.f32 %v4345_v6, %v4032_v32  ;;  %v5548_v37 = vmax.f32 %v1081_v29, 0.0  ;;  %v4640_v29 = vld [vmem:[#allocation16 + $0xb8] sm:$0xff]   ;;  %v4641_v30 = vld [vmem:[#allocation16 + $0x30] sm:$0xff]  }
 0x3aa   :  { %v4642_v31 = vld [vmem:[#allocation16 + $0x78] sm:$0xff]  }
 0x3ab   :  { %v5551_v38 = vmax.f32 %v5546_v33, 0.0  ;;  %v1075_v40 = vadd.f32 %v3723_v17, %v1065_v34  ;;  %v1066_v61 = vmul.f32 %v3722_v13, %v1054_v36  ;;  %v1095_v53 = vrot.slane %v5548_v37, 4  ;;  %v4623_v13 = vld [vmem:[#allocation16] sm:$0xff]   ;;  %v4643_v32 = vld [vmem:[#allocation16 + $0x38] sm:$0xff]  }
 0x3ad   :  { %v1079_v43 = vmax.f32 %v1075_v40, 0.0  ;;  %v1076_v45 = vadd.f32 %v3723_v17, %v1066_v61  ;;  %v1122_v42 = vpack.c.bf16 %v5551_v38, %v5548_v37  ;;  %v1096_v50 = vrot.slane %v5551_v38, 4  ;;  %v4628_v17 = vld [vmem:[#allocation16 + $0x98] sm:$0xff]  }
 0x3ae   :  { %v1109_v52 = vrot.slane %v5551_v38, 6 }
 0x3af   :  { %v1083_v4 = vadd.f32 %v1079_v43, %v5432_v41  ;;  %v1080_v47 = vmax.f32 %v1076_v45, 0.0  ;;  %4362 = vmatprep.mubr.bf16.mxu0 %v1122_v42  ;;  %v1108_v41 = vrot.slane %v5548_v37, 6  ;;  %v1102_v57 = vsel %vm1099_vm13, %v1095_v53, %v1096_v50 }
 0x3b1   :  { %v5556_v48 = vmax.f32 %v1083_v4, 0.0  ;;  %v5559_v49 = vadd.f32 %v1080_v47, %v5436_v44  ;;  %v1114_v58 = vsel %vm393_vm2, %v1108_v41, %v1109_v52  ;;  %v3762_v47 = vld [vmem:[%s5975_s4 + $0x1] ss:$0 sm:$0xff] }
 0x3b3   :  { %v5564_v51 = vmax.f32 %v5559_v49, 0.0  ;;  %v1110_v56 = vrot.slane %v5556_v48, 6  ;;  %v1097_v6 = vrot.slane %v5556_v48, 4 }
 0x3b5   :  { %v1098_v54 = vrot.slane %v5564_v51, 4  ;;  %v1125_v44 = vpack.c.bf16 %v5564_v51, %v5556_v48  ;;  %v1111_v55 = vrot.slane %v5564_v51, 6  ;;  %v1113_v3 = vsel %vm393_vm2, %v1109_v52, %v1110_v56 }
 0x3b6   :  { %v1101_v7 = vsel %vm1099_vm13, %v1096_v50, %v1097_v6 }
 0x3b7   :  { %4363 = vmatmul.mubr.bf16.vlgmr.msra.gmra.mrb[12].mxu0 %v1125_v44  ;;  %v1115_v59 = vsel %vm393_vm2, %v1111_v55, %v1108_v41  ;;  %v1103_v39 = vsel %vm1099_vm13, %v1098_v54, %v1095_v53  ;;  %v1112_v60 = vsel %vm393_vm2, %v1110_v56, %v1111_v55  ;;  %v3763_v41 = vld [vmem:[%s5976_s10 + $0x1] ss:$0 sm:$0xff] }
 0x3b8   :  { %v3751_v62 = vpack.c.bf16 %v1114_v58, %v1115_v59  ;;  %v3754_v0 = vpack.c.bf16 %v1102_v57, %v1103_v39  ;;  %4367 = vmatpush3.bf16.msra.mxu0 %v5538_v1  ;;  %v3757_v5 = vpack.c.bf16 %v1112_v60, %v1113_v3  ;;  %v1100_v1 = vsel %vm1099_vm13, %v1097_v6, %v1098_v54 }
 0x3b9   :  { %v3760_v10 = vpack.c.bf16 %v1100_v1, %v1101_v7  ;;  %4368 = vmatprep.subr.bf16.mxu0 %v4622_v12 }
 0x3ba   :  { %3752 = vmatprep.mubr.msk.bf16.mxu1 %vm5480_vm9, %v3751_v62 }
 0x3bb   :  { %3755 = vmatmul.mubr.msk.bf16.vlgmr.msra.gmra.mrb[16].mxu1 %vm5586_vm15, %v3754_v0 }
 0x3bc   :  { %3758 = vmatprep.mubr.msk.bf16.mxu1 %vm5502_vm12, %v3757_v5  ;;  %4082 = vmatpush3.bf16.msra.mxu1 %v4623_v13 }
 0x3bd   :  { %4369 = vmatpush3.bf16.msra.mxu0 %v4622_v12  ;;  %4083 = vmatprep.subr.bf16.mxu1 %v4624_v46 }
 0x3be   :  { %4370 = vmatprep.subr.bf16.mxu0 %v4625_v14 }
 0x3c0   :  { %4084 = vmatpush3.bf16.msra.mxu1 %v4626_v15 }
 0x3c1   :  { %4371 = vmatpush3.bf16.msra.mxu0 %v4625_v14  ;;  %4085 = vmatprep.subr.bf16.mxu1 %v4627_v16 }
 0x3c2   :  { %4372 = vmatprep.subr.bf16.mxu0 %v4628_v17 }
 0x3c3   :  { %3761 = vmatmul.mubr.msk.bf16.gmra.mrb[20].mxu1 %vm5606_vm1, %v3760_v10 }
 0x3c4   :  { %4086 = vmatpush3.bf16.msra.mxu1 %v4629_v18 }
 0x3c5   :  { %4373 = vmatpush3.bf16.msra.mxu0 %v4628_v17  ;;  %4087 = vmatprep.subr.bf16.mxu1 %v4630_v19 }
 0x3c6   :  { %4374 = vmatprep.subr.bf16.mxu0 %v4631_v20 }
 0x3c8   :  { %4088 = vmatpush3.bf16.msra.mxu1 %v4632_v21 }
 0x3c9   :  { %4375 = vmatpush3.bf16.msra.mxu0 %v4631_v20  ;;  %4089 = vmatprep.subr.bf16.mxu1 %v4633_v22 }
 0x3ca   :  { %4376 = vmatprep.subr.bf16.mxu0 %v4634_v23 }
 0x3cc   :  { %4090 = vmatpush3.bf16.msra.mxu1 %v4635_v24 }
 0x3cd   :  { %4377 = vmatpush3.bf16.msra.mxu0 %v4634_v23  ;;  %4091 = vmatprep.subr.bf16.mxu1 %v4636_v25 }
 0x3ce   :  { %4378 = vmatprep.subr.bf16.mxu0 %v4637_v26 }
 0x3d0   :  { %4092 = vmatpush3.bf16.msra.mxu1 %v4638_v27 }
 0x3d1   :  { %4379 = vmatpush3.bf16.msra.mxu0 %v4637_v26  ;;  %4093 = vmatprep.subr.bf16.mxu1 %v4639_v28 }
 0x3d2   :  { %4380 = vmatprep.subr.bf16.mxu0 %v4640_v29 }
 0x3d4   :  { %4094 = vmatpush3.bf16.msra.mxu1 %v4641_v30 }
 0x3d5   :  { %4381 = vmatpush3.bf16.msra.mxu0 %v4640_v29  ;;  %4095 = vmatprep.subr.bf16.mxu1 %v4642_v31 }
 0x3d8   :  { %4096 = vmatpush3.bf16.msra.mxu1 %v4643_v32 }
 0x48a   :  { %v4364_v34 = vpop.f32.mrb[12].mxu0 }
 0x48b   :  { %v1401_v36 = vpop.f32.mrb[13].mxu0 }
 0x48c   :  { %v4365_v40 = vpop.f32.mrb[14].mxu0 }
 0x48d   :  { %v1404_v61 = vpop.f32.mrb[15].mxu0 }
 0x48e   :  { %v4059_v43 = vpop.f32.mrb[16].mxu1 }
 0x48f   :  { %v4060_v45 = vpop.f32.mrb[17].mxu1 }
 0x490   :  { %v4061_v42 = vadd.f32 %v4060_v45, %v4059_v43  ;;  %v4062_v4 = vpop.f32.mrb[18].mxu1  ;;  %v4645_v43 = vld [vmem:[#allocation10 + $0x40] sm:$0xff]   ;;  %v4646_v45 = vld [vmem:[#allocation10 + $0x88] sm:$0xff]  }
 0x491   :  { %v4063_v50 = vpop.f32.mrb[19].mxu1  ;;  %4119 = vmatprep.subr.bf16.mxu1 %v4645_v43 }
 0x492   :  { %v1402_v52 = vadd.f32 %v4061_v42, %v1401_v36  ;;  %v4064_v53 = vadd.f32 %v4063_v50, %v4062_v4  ;;  %v4647_v42 = vld [vmem:[#allocation10] sm:$0xff]   ;;  %v4649_v4 = vld [vmem:[#allocation10 + $0x90] sm:$0xff]   ;;  %v4652_v50 = vld [vmem:[#allocation10 + $0x98] sm:$0xff]  }
 0x494   :  { %v1422_v54 = vmul.f32 %v3762_v47, %v1402_v52  ;;  %v1405_v44 = vadd.f32 %v4064_v53, %v1404_v61  ;;  %v4644_v61 = vld [vmem:[#allocation10 + $0x80] sm:$0xff]   ;;  %v4653_v52 = vld [vmem:[#allocation10 + $0x10] sm:$0xff]   ;;  %v4654_v53 = vld [vmem:[#allocation10 + $0x58] sm:$0xff]  }
 0x495   :  { %4386 = vmatprep.subr.bf16.mxu0 %v4644_v61 }
 0x496   :  { %v1432_v55 = vadd.f32 %v3763_v41, %v1422_v54  ;;  %v1423_v56 = vmul.f32 %v3762_v47, %v1405_v44  ;;  %v4065_v57 = vpop.f32.mrb[20].mxu1  ;;  %v4656_v54 = vld [vmem:[#allocation10 + $0x18] sm:$0xff]   ;;  %v4657_v44 = vld [vmem:[#allocation10 + $0x60] sm:$0xff]  }
 0x497   :  { %v4066_v58 = vpop.f32.mrb[21].mxu1 }
 0x498   :  { %v1436_v59 = vmax.f32 %v1432_v55, 0.0  ;;  %v1433_v39 = vadd.f32 %v3763_v41, %v1423_v56  ;;  %v4067_v60 = vadd.f32 %v4066_v58, %v4065_v57  ;;  %v4068_v62 = vpop.f32.mrb[22].mxu1  ;;  %v4658_v55 = vld [vmem:[#allocation10 + $0xa8] sm:$0xff]   ;;  %v4659_v56 = vld [vmem:[#allocation10 + $0x20] sm:$0xff]   ;;  %v4661_v58 = vld [vmem:[#allocation10 + $0xb0] sm:$0xff]  }
 0x499   :  { %v4069_v0 = vpop.f32.mrb[23].mxu1  ;;  %v4660_v57 = vld [vmem:[#allocation10 + $0x68] sm:$0xff]  }
 0x49a   :  { %v1437_v3 = vmax.f32 %v1433_v39, 0.0  ;;  %v1410_v5 = vadd.f32 %v4364_v34, %v4067_v60  ;;  %v1444_v6 = vrot.slane %v1436_v59, 4  ;;  %v1456_v1 = vrot.slane %v1436_v59, 6  ;;  %v4663_v39 = vld [vmem:[#allocation10 + $0x70] sm:$0xff]   ;;  %v4664_v60 = vld [vmem:[#allocation10 + $0xb8] sm:$0xff]  }
 0x49b   :  { %v4070_v7 = vadd.f32 %v4069_v0, %v4068_v62  ;;  %v4665_v62 = vld [vmem:[#allocation10 + $0x30] sm:$0xff]   ;;  %v4666_v0 = vld [vmem:[#allocation10 + $0x78] sm:$0xff]  }
 0x49c   :  { %v1445_v10 = vrot.slane %v1437_v3, 4  ;;  %v1457_v11 = vrot.slane %v1437_v3, 6  ;;  %v1424_v12 = vmul.f32 %v3762_v47, %v1410_v5  ;;  %v1470_v13 = vpack.c.bf16 %v1437_v3, %v1436_v59  ;;  %v4662_v59 = vld [vmem:[#allocation10 + $0x28] sm:$0xff]   ;;  %v4667_v3 = vld [vmem:[#allocation10 + $0x38] sm:$0xff]   ;;  %v4668_v5 = vld [vmem:[#allocation17 + $0x80] sm:$0xff]  }
 0x49d   :  { %v1413_v46 = vadd.f32 %v4365_v40, %v4070_v7 }
 0x49e   :  { %v1450_v14 = vsel %vm1099_vm13, %v1444_v6, %v1445_v10  ;;  %v1434_v15 = vadd.f32 %v3763_v41, %v1424_v12  ;;  %4382 = vmatprep.mubr.bf16.mxu0 %v1470_v13  ;;  %v1462_v16 = vsel %vm393_vm2, %v1456_v1, %v1457_v11 }
 0x49f   :  { %v1425_v17 = vmul.f32 %v3762_v47, %v1413_v46  ;;  %v4650_v47 = vld [vmem:[#allocation10 + $0x8] sm:$0xff]  }
 0x4a0   :  { %v1438_v18 = vmax.f32 %v1434_v15, 0.0 }
 0x4a1   :  { %v1435_v19 = vadd.f32 %v3763_v41, %v1425_v17  ;;  %v4655_v41 = vld [vmem:[#allocation10 + $0xa0] sm:$0xff]  }
 0x4a2   :  { %v1446_v20 = vrot.slane %v1438_v18, 4  ;;  %v1458_v21 = vrot.slane %v1438_v18, 6 }
 0x4a3   :  { %v1439_v22 = vmax.f32 %v1435_v19, 0.0 }
 0x4a4   :  { %v1461_v23 = vsel %vm393_vm2, %v1457_v11, %v1458_v21  ;;  %v1449_v24 = vsel %vm1099_vm13, %v1445_v10, %v1446_v20 }
 0x4a5   :  { %v1447_v25 = vrot.slane %v1439_v22, 4  ;;  %v1459_v26 = vrot.slane %v1439_v22, 6  ;;  %v1473_v27 = vpack.c.bf16 %v1439_v22, %v1438_v18  ;;  %v3802_v18 = vld [vmem:[#allocation2 + $0x1] ss:$0 sm:$0xff] }
 0x4a7   :  { %v1451_v28 = vsel %vm1099_vm13, %v1447_v25, %v1444_v6  ;;  %4383 = vmatmul.mubr.bf16.vlgmr.msra.gmra.mrb[16].mxu0 %v1473_v27  ;;  %v1463_v29 = vsel %vm393_vm2, %v1459_v26, %v1456_v1  ;;  %v1460_v30 = vsel %vm393_vm2, %v1458_v21, %v1459_v26  ;;  %v1448_v31 = vsel %vm1099_vm13, %v1446_v20, %v1447_v25 }
 0x4a8   :  { %v3793_v32 = vpack.c.bf16 %v1450_v14, %v1451_v28  ;;  %v3790_v34 = vpack.c.bf16 %v1462_v16, %v1463_v29  ;;  %v3796_v36 = vpack.c.bf16 %v1460_v30, %v1461_v23  ;;  %v3799_v40 = vpack.c.bf16 %v1448_v31, %v1449_v24  ;;  %4387 = vmatpush3.bf16.msra.mxu0 %v4644_v61  ;;  %v3801_v14 = vld [vmem:[%s5977_s1 + $0x1] ss:$0 sm:$0xff] }
 0x4a9   :  { %4388 = vmatprep.subr.bf16.mxu0 %v4646_v45  ;;  %vm5107_vm2 = vmmov 0  }
 0x4aa   :  { %3791 = vmatprep.mubr.msk.bf16.mxu1 %vm5480_vm9, %v3790_v34 }
 0x4ab   :  { %3794 = vmatmul.mubr.msk.bf16.vlgmr.msra.gmra.mrb[24].mxu1 %vm5586_vm15, %v3793_v32 }
 0x4ac   :  { %3797 = vmatprep.mubr.msk.bf16.mxu1 %vm5502_vm12, %v3796_v36  ;;  %4120 = vmatpush3.bf16.msra.mxu1 %v4647_v42 }
 0x4ad   :  { %4389 = vmatpush3.bf16.msra.mxu0 %v4646_v45  ;;  %4121 = vmatprep.subr.bf16.mxu1 %v4648_v2 }
 0x4ae   :  { %4390 = vmatprep.subr.bf16.mxu0 %v4649_v4 }
 0x4b0   :  { %4122 = vmatpush3.bf16.msra.mxu1 %v4650_v47 }
 0x4b1   :  { %4391 = vmatpush3.bf16.msra.mxu0 %v4649_v4  ;;  %4123 = vmatprep.subr.bf16.mxu1 %v4651_v9 }
 0x4b2   :  { %4392 = vmatprep.subr.bf16.mxu0 %v4652_v50 }
 0x4b3   :  { %3800 = vmatmul.mubr.msk.bf16.gmra.mrb[28].mxu1 %vm5606_vm1, %v3799_v40 }
 0x4b4   :  { %4124 = vmatpush3.bf16.msra.mxu1 %v4653_v52 }
 0x4b5   :  { %4393 = vmatpush3.bf16.msra.mxu0 %v4652_v50  ;;  %4125 = vmatprep.subr.bf16.mxu1 %v4654_v53 }
 0x4b6   :  { %4394 = vmatprep.subr.bf16.mxu0 %v4655_v41 }
 0x4b8   :  { %4126 = vmatpush3.bf16.msra.mxu1 %v4656_v54 }
 0x4b9   :  { %4395 = vmatpush3.bf16.msra.mxu0 %v4655_v41  ;;  %4127 = vmatprep.subr.bf16.mxu1 %v4657_v44 }
 0x4ba   :  { %4396 = vmatprep.subr.bf16.mxu0 %v4658_v55 }
 0x4bc   :  { %4128 = vmatpush3.bf16.msra.mxu1 %v4659_v56 }
 0x4bd   :  { %4397 = vmatpush3.bf16.msra.mxu0 %v4658_v55  ;;  %4129 = vmatprep.subr.bf16.mxu1 %v4660_v57 }
 0x4be   :  { %4398 = vmatprep.subr.bf16.mxu0 %v4661_v58 }
 0x4c0   :  { %4130 = vmatpush3.bf16.msra.mxu1 %v4662_v59  ;;  %v5106_v59 = vmov 0.0  }
 0x4c1   :  { %4399 = vmatpush3.bf16.msra.mxu0 %v4661_v58  ;;  %4131 = vmatprep.subr.bf16.mxu1 %v4663_v39 }
 0x4c2   :  { %4400 = vmatprep.subr.bf16.mxu0 %v4664_v60 }
 0x4c4   :  { %4132 = vmatpush3.bf16.msra.mxu1 %v4665_v62 }
 0x4c5   :  { %4401 = vmatpush3.bf16.msra.mxu0 %v4664_v60  ;;  %4133 = vmatprep.subr.bf16.mxu1 %v4666_v0 }
 0x4c6   :  { %4406 = vmatprep.subr.bf16.mxu0 %v4668_v5 }
 0x4c8   :  { %4134 = vmatpush3.bf16.msra.mxu1 %v4667_v3  ;;  %v4669_v3 = vld [vmem:[#allocation17 + $0x40] sm:$0xff]  }
 0x4c9   :  { %4157 = vmatprep.subr.bf16.mxu1 %v4669_v3 }
 0x57a   :  { %v4384_v6 = vpop.f32.mrb[16].mxu0 }
 0x57b   :  { %v1749_v1 = vpop.f32.mrb[17].mxu0 }
 0x57c   :  { %v4385_v7 = vpop.f32.mrb[18].mxu0 }
 0x57d   :  { %v1752_v10 = vpop.f32.mrb[19].mxu0 }
 0x57e   :  { %v4097_v11 = vpop.f32.mrb[24].mxu1 }
 0x57f   :  { %v4098_v12 = vpop.f32.mrb[25].mxu1 }
 0x580   :  { %v4099_v13 = vadd.f32 %v4098_v12, %v4097_v11  ;;  %v4100_v46 = vpop.f32.mrb[26].mxu1  ;;  %v4675_v11 = vld [vmem:[#allocation17 + $0x50] sm:$0xff]   ;;  %v4676_v12 = vld [vmem:[#allocation17 + $0x98] sm:$0xff]  }
 0x581   :  { %v4101_v15 = vpop.f32.mrb[27].mxu1 }
 0x582   :  { %v1750_v16 = vadd.f32 %v4099_v13, %v1749_v1  ;;  %v4102_v17 = vadd.f32 %v4101_v15, %v4100_v46  ;;  %v4672_v1 = vld [vmem:[#allocation17 + $0x48] sm:$0xff]   ;;  %v4677_v13 = vld [vmem:[#allocation17 + $0x10] sm:$0xff]   ;;  %v4678_v46 = vld [vmem:[#allocation17 + $0x58] sm:$0xff]  }
 0x583   :  { %v4680_v15 = vld [vmem:[#allocation17 + $0x18] sm:$0xff]  }
 0x584   :  { %v1770_v19 = vmul.f32 %v3801_v14, %v1750_v16  ;;  %v1753_v20 = vadd.f32 %v4102_v17, %v1752_v10  ;;  %v4674_v10 = vld [vmem:[#allocation17 + $0x8] sm:$0xff]   ;;  %v4681_v16 = vld [vmem:[#allocation17 + $0x60] sm:$0xff]  }
 0x585   :  { %v4682_v17 = vld [vmem:[#allocation17 + $0xa8] sm:$0xff]  }
 0x586   :  { %v1780_v21 = vadd.f32 %v3802_v18, %v1770_v19  ;;  %v1771_v22 = vmul.f32 %v3801_v14, %v1753_v20  ;;  %v4103_v23 = vpop.f32.mrb[28].mxu1  ;;  %v4684_v19 = vld [vmem:[#allocation17 + $0x68] sm:$0xff]   ;;  %v4685_v20 = vld [vmem:[#allocation17 + $0xb0] sm:$0xff]  }
 0x587   :  { %v4104_v24 = vpop.f32.mrb[29].mxu1 }
 0x588   :  { %v1784_v25 = vmax.f32 %v1780_v21, 0.0  ;;  %v1781_v26 = vadd.f32 %v3802_v18, %v1771_v22  ;;  %v4105_v27 = vadd.f32 %v4104_v24, %v4103_v23  ;;  %v4106_v28 = vpop.f32.mrb[30].mxu1  ;;  %v4686_v21 = vld [vmem:[#allocation17 + $0x28] sm:$0xff]   ;;  %v4687_v22 = vld [vmem:[#allocation17 + $0x70] sm:$0xff]   ;;  %v4688_v23 = vld [vmem:[#allocation17 + $0xb8] sm:$0xff]  }
 0x589   :  { %v4107_v29 = vpop.f32.mrb[31].mxu1  ;;  %v4689_v24 = vld [vmem:[#allocation17 + $0x30] sm:$0xff]  }
 0x58a   :  { %v1788_v30 = vadd.f32 %v1784_v25, %v5548_v37  ;;  %v1785_v31 = vmax.f32 %v1781_v26, 0.0  ;;  %v1758_v32 = vadd.f32 %v4384_v6, %v4105_v27  ;;  %v4108_v34 = vadd.f32 %v4107_v29, %v4106_v28  ;;  %v4671_v6 = vld [vmem:[#allocation17] sm:$0xff]   ;;  %v4690_v25 = vld [vmem:[#allocation17 + $0x78] sm:$0xff]  }
 0x58b   :  { %v4691_v26 = vld [vmem:[#allocation17 + $0x38] sm:$0xff]  }
 0x58c   :  { %v5647_v36 = vadd.f32 %v1785_v31, %v5551_v38  ;;  %v1772_v40 = vmul.f32 %v3801_v14, %v1758_v32  ;;  %v1761_v61 = vadd.f32 %v4385_v7, %v4108_v34  ;;  %v5649_v43 = vmax.f32 %v1788_v30, 0.0  ;;  %v4673_v7 = vld [vmem:[#allocation17 + $0x90] sm:$0xff]   ;;  %v4692_v27 = vld [vmem:[%s5944_s12 + $0x40] sm:$0xff]  }
 0x58e   :  { %v1782_v45 = vadd.f32 %v3802_v18, %v1772_v40  ;;  %v1773_v42 = vmul.f32 %v3801_v14, %v1761_v61  ;;  %v5652_v2 = vmax.f32 %v5647_v36, 0.0  ;;  %v1806_v44 = vrot.slane %v5649_v43, 4  ;;  %v4679_v14 = vld [vmem:[#allocation17 + $0xa0] sm:$0xff]  }
 0x58f   :  { %v1818_v39 = vpack.c.bf16 %v5649_v43, %v5106_v59 }
 0x590   :  { %v1786_v4 = vmax.f32 %v1782_v45, 0.0  ;;  %v1783_v47 = vadd.f32 %v3802_v18, %v1773_v42  ;;  %v1820_v37 = vpack.c.bf16 %v5652_v2, %v5649_v43  ;;  %v1807_v41 = vrot.slane %v5652_v2, 4  ;;  %v4683_v18 = vld [vmem:[#allocation17 + $0x20] sm:$0xff]   ;;  %v3835_v45 = vld [vmem:[%s5975_s4 + $0x2] ss:$0 sm:$0xff] }
 0x592   :  { %v1790_v9 = vadd.f32 %v1786_v4, %v5556_v48  ;;  %v1787_v50 = vmax.f32 %v1783_v47, 0.0  ;;  %4402 = vmatprep.mubr.bf16.mxu0 %v1820_v37  ;;  %v1812_v56 = vsel %vm1099_vm13, %v1806_v44, %v1807_v41  ;;  %v3836_v37 = vld [vmem:[%s5976_s10 + $0x2] ss:$0 sm:$0xff] }
 0x594   :  { %v5657_v38 = vmax.f32 %v1790_v9, 0.0  ;;  %v5660_v52 = vadd.f32 %v1787_v50, %v5564_v51 }
 0x596   :  { %v5663_v53 = vmax.f32 %v5660_v52, 0.0  ;;  %v1808_v48 = vrot.slane %v5657_v38, 4  ;;  %v1821_v0 = vpack.c.bf16 %v5657_v38, %v5106_v59 }
 0x598   :  { %v1823_v54 = vpack.c.bf16 %v5663_v53, %v5657_v38  ;;  %v1809_v55 = vrot.slane %v5663_v53, 4  ;;  %v1811_v60 = vsel %vm1099_vm13, %v1807_v41, %v1808_v48 }
 0x59a   :  { %4403 = vmatmul.mubr.bf16.vlgmr.msra.gmra.mrb[20].mxu0 %v1823_v54  ;;  %v1813_v51 = vsel %vm1099_vm13, %v1809_v55, %v1806_v44  ;;  %v1810_v57 = vsel %vm1099_vm13, %v1808_v48, %v1809_v55 }
 0x59b   :  { %v3830_v58 = vpack.c.bf16 %v1812_v56, %v1813_v51  ;;  %4407 = vmatpush3.bf16.msra.mxu0 %v4668_v5  ;;  %v3833_v62 = vpack.c.bf16 %v1810_v57, %v1811_v60  ;;  %v4670_v5 = vld [vmem:[#allocation17 + $0x88] sm:$0xff]  }
 0x59c   :  { %4408 = vmatprep.subr.bf16.mxu0 %v4670_v5 }
 0x59d   :  { %3831 = vmatprep.mubr.msk.bf16.mxu1 %vm5586_vm15, %v3830_v58 }
 0x59e   :  { %2049 = vmatmul.mubr.bf16.vlgmr.msra.gmra.mrb[32].mxu1 %v1818_v39 }
 0x59f   :  { %3834 = vmatprep.mubr.msk.bf16.mxu1 %vm5606_vm1, %v3833_v62  ;;  %4158 = vmatpush3.bf16.msra.mxu1 %v4671_v6 }
 0x5a0   :  { %4409 = vmatpush3.bf16.msra.mxu0 %v4670_v5  ;;  %4159 = vmatprep.subr.bf16.mxu1 %v4672_v1 }
 0x5a1   :  { %4410 = vmatprep.subr.bf16.mxu0 %v4673_v7 }
 0x5a3   :  { %4160 = vmatpush3.bf16.msra.mxu1 %v4674_v10 }
 0x5a4   :  { %4411 = vmatpush3.bf16.msra.mxu0 %v4673_v7  ;;  %4161 = vmatprep.subr.bf16.mxu1 %v4675_v11 }
 0x5a5   :  { %4412 = vmatprep.subr.bf16.mxu0 %v4676_v12 }
 0x5a6   :  { %2057 = vmatmul.mubr.bf16.gmra.mrb[36].mxu1 %v1821_v0 }
 0x5a7   :  { %4162 = vmatpush3.bf16.msra.mxu1 %v4677_v13 }
 0x5a8   :  { %4413 = vmatpush3.bf16.msra.mxu0 %v4676_v12  ;;  %4163 = vmatprep.subr.bf16.mxu1 %v4678_v46 }
 0x5a9   :  { %4414 = vmatprep.subr.bf16.mxu0 %v4679_v14 }
 0x5ab   :  { %4164 = vmatpush3.bf16.msra.mxu1 %v4680_v15 }
 0x5ac   :  { %4415 = vmatpush3.bf16.msra.mxu0 %v4679_v14  ;;  %4165 = vmatprep.subr.bf16.mxu1 %v4681_v16 }
 0x5ad   :  { %4416 = vmatprep.subr.bf16.mxu0 %v4682_v17 }
 0x5af   :  { %4166 = vmatpush3.bf16.msra.mxu1 %v4683_v18 }
 0x5b0   :  { %4417 = vmatpush3.bf16.msra.mxu0 %v4682_v17  ;;  %4167 = vmatprep.subr.bf16.mxu1 %v4684_v19 }
 0x5b1   :  { %4418 = vmatprep.subr.bf16.mxu0 %v4685_v20 }
 0x5b3   :  { %4168 = vmatpush3.bf16.msra.mxu1 %v4686_v21 }
 0x5b4   :  { %4419 = vmatpush3.bf16.msra.mxu0 %v4685_v20  ;;  %4169 = vmatprep.subr.bf16.mxu1 %v4687_v22  ;;  %v4693_v22 = vld [vmem:[%s5944_s12] sm:$0xff]  }
 0x5b5   :  { %4420 = vmatprep.subr.bf16.mxu0 %v4688_v23 }
 0x5b7   :  { %4170 = vmatpush3.bf16.msra.mxu1 %v4689_v24  ;;  %v4694_v24 = vld [vmem:[%s5944_s12 + $0x48] sm:$0xff]  }
 0x5b8   :  { %4421 = vmatpush3.bf16.msra.mxu0 %v4688_v23  ;;  %4171 = vmatprep.subr.bf16.mxu1 %v4690_v25 }
 0x5bb   :  { %4172 = vmatpush3.bf16.msra.mxu1 %v4691_v26  ;;  %v4696_v26 = vld [vmem:[%s5944_s12 + $0x50] sm:$0xff]  }
 0x5bc   :  { %4195 = vmatprep.subr.bf16.mxu1 %v4692_v27  ;;  %v4699_v27 = vld [vmem:[%s5944_s12 + $0x18] sm:$0xff]  }
 0x66d   :  { %v4404_v28 = vpop.f32.mrb[20].mxu0 }
 0x66e   :  { %v2099_v29 = vpop.f32.mrb[21].mxu0 }
 0x66f   :  { %v4405_v30 = vpop.f32.mrb[22].mxu0 }
 0x670   :  { %v2102_v31 = vpop.f32.mrb[23].mxu0 }
 0x671   :  { %v4135_v32 = vpop.f32.mrb[32].mxu1 }
 0x672   :  { %v4136_v34 = vpop.f32.mrb[33].mxu1 }
 0x673   :  { %v4137_v40 = vadd.f32 %v4136_v34, %v4135_v32  ;;  %v4138_v61 = vpop.f32.mrb[34].mxu1  ;;  %v4704_v32 = vld [vmem:[%s5944_s12 + $0x70] sm:$0xff]  }
 0x674   :  { %v4139_v42 = vpop.f32.mrb[35].mxu1  ;;  %v4705_v34 = vld [vmem:[%s5944_s12 + $0x30] sm:$0xff]  }
 0x675   :  { %v2100_v4 = vadd.f32 %v4137_v40, %v2099_v29  ;;  %v4140_v47 = vadd.f32 %v4139_v42, %v4138_v61  ;;  %v4701_v29 = vld [vmem:[%s5944_s12 + $0x20] sm:$0xff]   ;;  %v4706_v40 = vld [vmem:[%s5944_s12 + $0x78] sm:$0xff]   ;;  %v4709_v42 = vld [vmem:[#allocation19] sm:$0xff]  }
 0x676   :  { %v4707_v61 = vld [vmem:[%s5944_s12 + $0x38] sm:$0xff]  }
 0x677   :  { %v2120_v9 = vmul.f32 %v3835_v45, %v2100_v4  ;;  %v2103_v50 = vadd.f32 %v4140_v47, %v2102_v31  ;;  %v4703_v31 = vld [vmem:[%s5944_s12 + $0x28] sm:$0xff]   ;;  %v4710_v4 = vld [vmem:[#allocation19 + $0x48] sm:$0xff]  }
 0x678   :  { %v4711_v47 = vld [vmem:[#allocation19 + $0x8] sm:$0xff]  }
 0x679   :  { %v2130_v41 = vadd.f32 %v3836_v37, %v2120_v9  ;;  %v2121_v54 = vmul.f32 %v3835_v45, %v2103_v50  ;;  %v4141_v44 = vpop.f32.mrb[36].mxu1  ;;  %v4713_v9 = vld [vmem:[#allocation19 + $0x10] sm:$0xff]   ;;  %v4714_v50 = vld [vmem:[#allocation19 + $0x58] sm:$0xff]  }
 0x67a   :  { %v4142_v55 = vpop.f32.mrb[37].mxu1 }
 0x67b   :  { %v4143_v48 = vadd.f32 %v4142_v55, %v4141_v44  ;;  %v4144_v56 = vpop.f32.mrb[38].mxu1  ;;  %v2131_v51 = vadd.f32 %v3836_v37, %v2121_v54  ;;  %v2134_v57 = vmax.f32 %v2130_v41, 0.0  ;;  %v4715_v41 = vld [vmem:[#allocation19 + $0x18] sm:$0xff]   ;;  %v4716_v54 = vld [vmem:[#allocation19 + $0x60] sm:$0xff]  }
 0x67c   :  { %v4145_v58 = vpop.f32.mrb[39].mxu1 }
 0x67d   :  { %v2108_v39 = vadd.f32 %v4404_v28, %v4143_v48  ;;  %v4146_v60 = vadd.f32 %v4145_v58, %v4144_v56  ;;  %v2135_v62 = vmax.f32 %v2131_v51, 0.0  ;;  %v2146_v5 = vrot.slane %v2134_v57, 4  ;;  %v4700_v28 = vld [vmem:[%s5944_s12 + $0x60] sm:$0xff]  }
 0x67e   :  { %v2158_v23 = vpack.c.bf16 %v2134_v57, %v5106_v59 }
 0x67f   :  { %v2122_v0 = vmul.f32 %v3835_v45, %v2108_v39  ;;  %v2111_v3 = vadd.f32 %v4405_v30, %v4146_v60  ;;  %v2147_v6 = vrot.slane %v2135_v62, 4  ;;  %v2160_v1 = vpack.c.bf16 %v2135_v62, %v2134_v57  ;;  %v4702_v30 = vld [vmem:[%s5944_s12 + $0x68] sm:$0xff]   ;;  %v3868_v60 = vld [vmem:[%s5977_s1 + $0x2] ss:$0 sm:$0xff] }
 0x681   :  { %v2132_v7 = vadd.f32 %v3836_v37, %v2122_v0  ;;  %v2123_v10 = vmul.f32 %v3835_v45, %v2111_v3  ;;  %4422 = vmatprep.mubr.bf16.mxu0 %v2160_v1  ;;  %v2152_v11 = vsel %vm1099_vm13, %v2146_v5, %v2147_v6  ;;  %v4708_v45 = vld [vmem:[#allocation19 + $0x40] sm:$0xff]  }
 0x682   :  { %4223 = vmatprep.subr.bf16.mxu0 %v4708_v45  ;;  %v4721_v45 = vld [vmem:[#allocation19 + $0x30] sm:$0xff]  }
 0x683   :  { %v2136_v12 = vmax.f32 %v2132_v7, 0.0  ;;  %v2133_v13 = vadd.f32 %v3836_v37, %v2123_v10  ;;  %v4712_v37 = vld [vmem:[#allocation19 + $0x50] sm:$0xff]  }
 0x685   :  { %v2148_v46 = vrot.slane %v2136_v12, 4  ;;  %v2137_v14 = vmax.f32 %v2133_v13, 0.0  ;;  %v2161_v25 = vpack.c.bf16 %v2136_v12, %v5106_v59 }
 0x687   :  { %v2149_v15 = vrot.slane %v2137_v14, 4  ;;  %v2163_v16 = vpack.c.bf16 %v2137_v14, %v2136_v12  ;;  %v2151_v17 = vsel %vm1099_vm13, %v2147_v6, %v2148_v46 }
 0x689   :  { %4423 = vmatmul.mubr.bf16.vlgmr.msra.gmra.mrb[24].mxu0 %v2163_v16  ;;  %v2153_v18 = vsel %vm1099_vm13, %v2149_v15, %v2146_v5  ;;  %v2150_v19 = vsel %vm1099_vm13, %v2148_v46, %v2149_v15  ;;  %v3869_v5 = vld [vmem:[#allocation2 + $0x2] ss:$0 sm:$0xff] }
 0x68a   :  { %v3863_v20 = vpack.c.bf16 %v2152_v11, %v2153_v18  ;;  %v3866_v21 = vpack.c.bf16 %v2150_v19, %v2151_v17  ;;  %4224 = vmatpush3.bf16.msra.mxu0 %v4709_v42  ;;  %v4722_v42 = vld [vmem:[#allocation19 + $0x78] sm:$0xff]  }
 0x68b   :  { %4225 = vmatprep.subr.bf16.mxu0 %v4710_v4  ;;  %v4723_v4 = vld [vmem:[#allocation19 + $0x38] sm:$0xff]  }
 0x68c   :  { %3864 = vmatprep.mubr.msk.bf16.mxu1 %vm5586_vm15, %v3863_v20 }
 0x68d   :  { %2389 = vmatmul.mubr.bf16.vlgmr.msra.gmra.mrb[40].mxu1 %v2158_v23 }
 0x68e   :  { %3867 = vmatprep.mubr.msk.bf16.mxu1 %vm5606_vm1, %v3866_v21  ;;  %4196 = vmatpush3.bf16.msra.mxu1 %v4693_v22  ;;  %v1792_v21 = vadd.f32 %v5647_v36, %v5546_v33 }
 0x68f   :  { %4197 = vmatprep.subr.bf16.mxu1 %v4694_v24  ;;  %4226 = vmatpush3.bf16.msra.mxu0 %v4711_v47  ;;  %v4724_v47 = vld [vmem:[#allocation11] sm:$0xff]  }
 0x690   :  { %4227 = vmatprep.subr.bf16.mxu0 %v4712_v37  ;;  %v4725_v37 = vld [vmem:[#allocation11 + $0x8] sm:$0xff]  }
 0x692   :  { %4198 = vmatpush3.bf16.msra.mxu1 %v4695_v35 }
 0x693   :  { %4199 = vmatprep.subr.bf16.mxu1 %v4696_v26  ;;  %4228 = vmatpush3.bf16.msra.mxu0 %v4713_v9 }
 0x694   :  { %4229 = vmatprep.subr.bf16.mxu0 %v4714_v50  ;;  %v3888_v50 = vld [vmem:[%s5975_s4 + $0x3] ss:$0 sm:$0xff] }
 0x695   :  { %2397 = vmatmul.mubr.bf16.gmra.mrb[44].mxu1 %v2161_v25 }
 0x696   :  { %4200 = vmatpush3.bf16.msra.mxu1 %v4697_v63 }
 0x697   :  { %4201 = vmatprep.subr.bf16.mxu1 %v4698_v8  ;;  %4230 = vmatpush3.bf16.msra.mxu0 %v4715_v41 }
 0x698   :  { %4231 = vmatprep.subr.bf16.mxu0 %v4716_v54 }
 0x69a   :  { %4202 = vmatpush3.bf16.msra.mxu1 %v4699_v27 }
 0x69b   :  { %4203 = vmatprep.subr.bf16.mxu1 %v4700_v28 }
 0x69e   :  { %4204 = vmatpush3.bf16.msra.mxu1 %v4701_v29  ;;  %v1793_v29 = vadd.f32 %v5660_v52, %v5559_v49  ;;  %v4717_v49 = vld [vmem:[#allocation19 + $0x20] sm:$0xff]   ;;  %v4718_v52 = vld [vmem:[#allocation19 + $0x68] sm:$0xff]  }
 0x69f   :  { %4205 = vmatprep.subr.bf16.mxu1 %v4702_v30  ;;  %4232 = vmatpush3.bf16.msra.mxu0 %v4717_v49  ;;  %v3908_v49 = vld [vmem:[#allocation2 + $0x3] ss:$0 sm:$0xff] }
 0x6a0   :  { %4233 = vmatprep.subr.bf16.mxu0 %v4718_v52 }
 0x6a2   :  { %4206 = vmatpush3.bf16.msra.mxu1 %v4703_v31 }
 0x6a3   :  { %4207 = vmatprep.subr.bf16.mxu1 %v4704_v32 }
 0x6a6   :  { %4208 = vmatpush3.bf16.msra.mxu1 %v4705_v34 }
 0x6a7   :  { %4209 = vmatprep.subr.bf16.mxu1 %v4706_v40 }
 0x6aa   :  { %4210 = vmatpush3.bf16.msra.mxu1 %v4707_v61  ;;  %v4720_v61 = vld [vmem:[#allocation19 + $0x70] sm:$0xff]  }
 0x6ab   :  { %4426 = vmatprep.subr.bf16.mxu1 %v4724_v47 }
 0x75c   :  { %v4424_v44 = vpop.f32.mrb[24].mxu0 }
 0x75d   :  { %v2439_v55 = vpop.f32.mrb[25].mxu0 }
 0x75e   :  { %v4425_v48 = vpop.f32.mrb[26].mxu0 }
 0x75f   :  { %v2442_v56 = vpop.f32.mrb[27].mxu0 }
 0x760   :  { %v4173_v51 = vpop.f32.mrb[40].mxu1 }
 0x761   :  { %v4174_v57 = vpop.f32.mrb[41].mxu1 }
 0x762   :  { %v4175_v58 = vadd.f32 %v4174_v57, %v4173_v51  ;;  %v4176_v39 = vpop.f32.mrb[42].mxu1 }
 0x763   :  { %v4177_v62 = vpop.f32.mrb[43].mxu1 }
 0x764   :  { %v2440_v0 = vadd.f32 %v4175_v58, %v2439_v55  ;;  %v4178_v3 = vadd.f32 %v4177_v62, %v4176_v39  ;;  %v3889_v55 = vld [vmem:[%s5976_s10 + $0x3] ss:$0 sm:$0xff] }
 0x766   :  { %v2460_v6 = vmul.f32 %v3868_v60, %v2440_v0  ;;  %v2443_v1 = vadd.f32 %v4178_v3, %v2442_v56 }
 0x768   :  { %v2470_v7 = vadd.f32 %v3869_v5, %v2460_v6  ;;  %v2461_v10 = vmul.f32 %v3868_v60, %v2443_v1  ;;  %v4179_v11 = vpop.f32.mrb[44].mxu1 }
 0x769   :  { %v4180_v12 = vpop.f32.mrb[45].mxu1 }
 0x76a   :  { %v2474_v13 = vmax.f32 %v2470_v7, 0.0  ;;  %v2471_v46 = vadd.f32 %v3869_v5, %v2461_v10  ;;  %v4181_v14 = vadd.f32 %v4180_v12, %v4179_v11  ;;  %v4182_v15 = vpop.f32.mrb[46].mxu1 }
 0x76b   :  { %v4183_v16 = vpop.f32.mrb[47].mxu1 }
 0x76c   :  { %v2475_v17 = vmax.f32 %v2471_v46, 0.0  ;;  %v2448_v18 = vadd.f32 %v4424_v44, %v4181_v14  ;;  %v4184_v19 = vadd.f32 %v4183_v16, %v4182_v15  ;;  %v2478_v20 = vadd.f32 %v2474_v13, %v5649_v43 }
 0x76e   :  { %v2462_v22 = vmul.f32 %v3868_v60, %v2448_v18  ;;  %v2451_v23 = vadd.f32 %v4425_v48, %v4184_v19  ;;  %v5762_v24 = vadd.f32 %v2475_v17, %v5652_v2  ;;  %v5764_v35 = vmax.f32 %v2478_v20, 0.0  ;;  %v4726_v19 = vld [vmem:[#allocation11 + $0x10] sm:$0xff]   ;;  %v4727_v20 = vld [vmem:[#allocation11 + $0x18] sm:$0xff]  }
 0x770   :  { %v2472_v25 = vadd.f32 %v3869_v5, %v2462_v22  ;;  %v2463_v26 = vmul.f32 %v3868_v60, %v2451_v23  ;;  %v5767_v63 = vadd.f32 %v5762_v24, %v1792_v21  ;;  %v2485_v8 = vmax.f32 %v5762_v24, 0.0  ;;  %v4728_v21 = vld [vmem:[#allocation11 + $0x20] sm:$0xff]   ;;  %v4729_v22 = vld [vmem:[#allocation11 + $0x28] sm:$0xff]   ;;  %v4730_v23 = vld [vmem:[#allocation11 + $0x30] sm:$0xff]  }
 0x771   :  { %v2496_v36 = vpack.c.bf16 %v5764_v35, %v5106_v59 }
 0x772   :  { %v2476_v27 = vmax.f32 %v2472_v25, 0.0  ;;  %v2473_v28 = vadd.f32 %v3869_v5, %v2463_v26  ;;  %v2497_v33 = vpack.c.bf16 %v2485_v8, %v5764_v35  ;;  %v4731_v25 = vld [vmem:[#allocation11 + $0x38] sm:$0xff]   ;;  %v4732_v26 = vld [vmem:[#allocation20] sm:$0xff]  }
 0x774   :  { %v2477_v43 = vmax.f32 %v2473_v28, 0.0  ;;  %2660 = vmatprep.mubr.bf16.mxu1 %v2497_v33  ;;  %v2480_v2 = vadd.f32 %v2476_v27, %v5657_v38  ;;  %v4733_v27 = vld [vmem:[#allocation20 + $0x8] sm:$0xff]   ;;  %v4734_v28 = vld [vmem:[#allocation20 + $0x10] sm:$0xff]   ;;  %v4735_v33 = vld [vmem:[#allocation20 + $0x18] sm:$0xff]  }
 0x775   :  { %2661 = vmatmul.mubr.bf16.vlgmr.msra.gmra.mrb[48].mxu1 %v2496_v36  ;;  %v4736_v36 = vld [vmem:[#allocation20 + $0x20] sm:$0xff]  }
 0x776   :  { %v5779_v30 = vadd.f32 %v2477_v43, %v5663_v53  ;;  %v5781_v31 = vmax.f32 %v2480_v2, 0.0  ;;  %v4719_v53 = vld [vmem:[#allocation19 + $0x28] sm:$0xff]   ;;  %4427 = vmatpush3.bf16.msra.mxu1 %v4724_v47  ;;  %v3907_v2 = vld [vmem:[%s5977_s1 + $0x3] ss:$0 sm:$0xff] }
 0x777   :  { %4234 = vmatpush3.bf16.msra.mxu0 %v4719_v53  ;;  %4428 = vmatprep.subr.bf16.mxu1 %v4725_v37 }
 0x778   :  { %v5784_v32 = vadd.f32 %v5779_v30, %v1793_v29  ;;  %v2487_v34 = vmax.f32 %v5779_v30, 0.0  ;;  %v2498_v38 = vpack.c.bf16 %v5781_v31, %v5106_v59  ;;  %4235 = vmatprep.subr.bf16.mxu0 %v4720_v61  ;;  %v4738_v30 = vld [vmem:[#allocation20 + $0x30] sm:$0xff]  }
 0x77a   :  { %v2499_v40 = vpack.c.bf16 %v2487_v34, %v5781_v31  ;;  %4429 = vmatpush3.bf16.msra.mxu1 %v4725_v37 }
 0x77b   :  { %4236 = vmatpush3.bf16.msra.mxu0 %v4721_v45  ;;  %4430 = vmatprep.subr.bf16.mxu1 %v4726_v19 }
 0x77c   :  { %2668 = vmatprep.mubr.bf16.mxu1 %v2499_v40  ;;  %4237 = vmatprep.subr.bf16.mxu0 %v4722_v42 }
 0x77d   :  { %2669 = vmatmul.mubr.bf16.gmra.mrb[52].mxu1 %v2498_v38 }
 0x77e   :  { %4431 = vmatpush3.bf16.msra.mxu1 %v4726_v19 }
 0x77f   :  { %4238 = vmatpush3.bf16.msra.mxu0 %v4723_v4  ;;  %4432 = vmatprep.subr.bf16.mxu1 %v4727_v20 }
 0x780   :  { %4446 = vmatprep.subr.bf16.mxu0 %v4732_v26 }
 0x782   :  { %4433 = vmatpush3.bf16.msra.mxu1 %v4727_v20 }
 0x783   :  { %4434 = vmatprep.subr.bf16.mxu1 %v4728_v21 }
 0x786   :  { %4435 = vmatpush3.bf16.msra.mxu1 %v4728_v21 }
 0x787   :  { %4436 = vmatprep.subr.bf16.mxu1 %v4729_v22 }
 0x78a   :  { %4437 = vmatpush3.bf16.msra.mxu1 %v4729_v22 }
 0x78b   :  { %4438 = vmatprep.subr.bf16.mxu1 %v4730_v23 }
 0x78e   :  { %4439 = vmatpush3.bf16.msra.mxu1 %v4730_v23 }
 0x78f   :  { %4440 = vmatprep.subr.bf16.mxu1 %v4731_v25 }
 0x792   :  { %4441 = vmatpush3.bf16.msra.mxu1 %v4731_v25 }
 0x848   :  { %v4211_v9 = vpop.f32.mrb[48].mxu1 }
 0x849   :  { %v4212_v41 = vpop.f32.mrb[49].mxu1 }
 0x84a   :  { %v4213_v54 = vadd.f32 %v4212_v41, %v4211_v9  ;;  %v4214_v44 = vpop.f32.mrb[50].mxu1 }
 0x84b   :  { %v4215_v48 = vpop.f32.mrb[51].mxu1 }
 0x84c   :  { %v2683_v56 = vmul.f32 %v4213_v54, %v3888_v50  ;;  %v4216_v51 = vadd.f32 %v4215_v48, %v4214_v44 }
 0x84e   :  { %v2693_v57 = vadd.f32 %v3889_v55, %v2683_v56  ;;  %v2684_v58 = vmul.f32 %v4216_v51, %v3888_v50 }
 0x850   :  { %v2694_v39 = vadd.f32 %v3889_v55, %v2684_v58  ;;  %v4217_v60 = vpop.f32.mrb[52].mxu1  ;;  %v2697_v62 = vmax.f32 %v2693_v57, 0.0 }
 0x851   :  { %v4218_v0 = vpop.f32.mrb[53].mxu1 }
 0x852   :  { %v2698_v3 = vmax.f32 %v2694_v39, 0.0  ;;  %v4219_v5 = vadd.f32 %v4218_v0, %v4217_v60  ;;  %v4220_v6 = vpop.f32.mrb[54].mxu1  ;;  %v2709_v12 = vpack.c.bf16 %v2697_v62, %v5106_v59 }
 0x853   :  { %v4221_v1 = vpop.f32.mrb[55].mxu1 }
 0x854   :  { %v2685_v7 = vmul.f32 %v4219_v5, %v3888_v50  ;;  %v4222_v10 = vadd.f32 %v4221_v1, %v4220_v6  ;;  %v2710_v11 = vpack.c.bf16 %v2698_v3, %v2697_v62 }
 0x856   :  { %v2695_v13 = vadd.f32 %v3889_v55, %v2685_v7  ;;  %v2686_v46 = vmul.f32 %v4222_v10, %v3888_v50  ;;  %2873 = vmatprep.mubr.bf16.mxu0 %v2710_v11  ;;  %v4737_v7 = vld [vmem:[#allocation20 + $0x28] sm:$0xff]   ;;  %v4740_v10 = vld [vmem:[#allocation13] sm:$0xff]  }
 0x857   :  { %2874 = vmatmul.mubr.bf16.vlgmr.msra.gmra.mrb[28].mxu0 %v2709_v12  ;;  %v4741_v11 = vld [vmem:[#allocation13 + $0x8] sm:$0xff]   ;;  %4466 = vmatprep.subr.bf16.mxu1 %v4740_v10  ;;  %v4743_v12 = vld [vmem:[#allocation13 + $0x18] sm:$0xff]  }
 0x858   :  { %v2696_v14 = vadd.f32 %v3889_v55, %v2686_v46  ;;  %v2699_v15 = vmax.f32 %v2695_v13, 0.0  ;;  %4447 = vmatpush3.bf16.msra.mxu0 %v4732_v26  ;;  %v3919_v13 = vld [vmem:[%s5975_s4 + $0x4] ss:$0 sm:$0xff] }
 0x859   :  { %4448 = vmatprep.subr.bf16.mxu0 %v4733_v27  ;;  %v3920_v46 = vld [vmem:[%s5976_s10 + $0x4] ss:$0 sm:$0xff] }
 0x85a   :  { %v2700_v16 = vmax.f32 %v2696_v14, 0.0  ;;  %v2711_v18 = vpack.c.bf16 %v2699_v15, %v5106_v59 }
 0x85c   :  { %v2712_v17 = vpack.c.bf16 %v2700_v16, %v2699_v15  ;;  %4449 = vmatpush3.bf16.msra.mxu0 %v4733_v27 }
 0x85d   :  { %4450 = vmatprep.subr.bf16.mxu0 %v4734_v28 }
 0x85e   :  { %2881 = vmatprep.mubr.bf16.mxu0 %v2712_v17 }
 0x85f   :  { %2882 = vmatmul.mubr.bf16.gmra.mrb[32].mxu0 %v2711_v18 }
 0x860   :  { %4451 = vmatpush3.bf16.msra.mxu0 %v4734_v28 }
 0x861   :  { %4452 = vmatprep.subr.bf16.mxu0 %v4735_v33 }
 0x864   :  { %4453 = vmatpush3.bf16.msra.mxu0 %v4735_v33 }
 0x865   :  { %4454 = vmatprep.subr.bf16.mxu0 %v4736_v36 }
 0x868   :  { %4455 = vmatpush3.bf16.msra.mxu0 %v4736_v36 }
 0x869   :  { %4456 = vmatprep.subr.bf16.mxu0 %v4737_v7 }
 0x86c   :  { %4457 = vmatpush3.bf16.msra.mxu0 %v4737_v7 }
 0x86d   :  { %4458 = vmatprep.subr.bf16.mxu0 %v4738_v30 }
 0x870   :  { %4459 = vmatpush3.bf16.msra.mxu0 %v4738_v30 }
 0x92a   :  { %v4239_v43 = vpop.f32.mrb[28].mxu0 }
 0x92b   :  { %v4240_v29 = vpop.f32.mrb[29].mxu0 }
 0x92c   :  { %v4241_v40 = vadd.f32 %v4240_v29, %v4239_v43  ;;  %v4242_v38 = vpop.f32.mrb[30].mxu0  ;;  %v4744_v29 = vld [vmem:[#allocation13 + $0x20] sm:$0xff]  }
 0x92d   :  { %v4243_v52 = vpop.f32.mrb[31].mxu0 }
 0x92e   :  { %v2896_v53 = vmul.f32 %v4241_v40, %v3907_v2  ;;  %v4244_v61 = vadd.f32 %v4243_v52, %v4242_v38  ;;  %v4745_v40 = vld [vmem:[#allocation13 + $0x28] sm:$0xff]   ;;  %v4746_v38 = vld [vmem:[#allocation13 + $0x30] sm:$0xff]   ;;  %v4748_v52 = vld [vmem:[#allocation22] sm:$0xff]  }
 0x930   :  { %v2906_v45 = vadd.f32 %v3908_v49, %v2896_v53  ;;  %v2897_v42 = vmul.f32 %v4244_v61, %v3907_v2  ;;  %v4749_v53 = vld [vmem:[#allocation22 + $0x8] sm:$0xff]   ;;  %v4750_v61 = vld [vmem:[#allocation22 + $0x10] sm:$0xff]  }
 0x932   :  { %v2910_v4 = vmax.f32 %v2906_v45, 0.0  ;;  %v2907_v47 = vadd.f32 %v3908_v49, %v2897_v42  ;;  %v4245_v37 = vpop.f32.mrb[32].mxu0  ;;  %v4751_v45 = vld [vmem:[#allocation22 + $0x18] sm:$0xff]   ;;  %v4752_v42 = vld [vmem:[#allocation22 + $0x20] sm:$0xff]  }
 0x933   :  { %v4246_v9 = vpop.f32.mrb[33].mxu0 }
 0x934   :  { %v2911_v50 = vmax.f32 %v2907_v47, 0.0  ;;  %v4247_v41 = vadd.f32 %v4246_v9, %v4245_v37  ;;  %v4248_v54 = vpop.f32.mrb[34].mxu0  ;;  %v5804_v44 = vadd.f32 %v2910_v4, %v5764_v35  ;;  %v3930_v4 = vld [vmem:[%s5977_s1 + $0x4] ss:$0 sm:$0xff] }
 0x935   :  { %v4249_v55 = vpop.f32.mrb[35].mxu0  ;;  %v3931_v47 = vld [vmem:[#allocation2 + $0x4] ss:$0 sm:$0xff] }
 0x936   :  { %v5808_v48 = vadd.f32 %v2911_v50, %v2485_v8  ;;  %v2898_v56 = vmul.f32 %v4247_v41, %v3907_v2  ;;  %v4250_v51 = vadd.f32 %v4249_v55, %v4248_v54  ;;  %v2920_v57 = vmax.f32 %v5804_v44, 0.0 }
 0x938   :  { %v2908_v58 = vadd.f32 %v3908_v49, %v2898_v56  ;;  %v2899_v39 = vmul.f32 %v4250_v51, %v3907_v2  ;;  %v2921_v60 = vmax.f32 %v5808_v48, 0.0  ;;  %v5814_v62 = vadd.f32 %v5808_v48, %v5767_v63 }
 0x93a   :  { %v2912_v0 = vmax.f32 %v2908_v58, 0.0  ;;  %v2909_v35 = vadd.f32 %v3908_v49, %v2899_v39  ;;  %v2928_v24 = vpack.c.bf16 %v2921_v60, %v2920_v57  ;;  %v4747_v49 = vld [vmem:[#allocation13 + $0x38] sm:$0xff]  }
 0x93c   :  { %v5821_v8 = vadd.f32 %v2912_v0, %v5781_v31  ;;  %v2913_v3 = vmax.f32 %v2909_v35, 0.0  ;;  %4442 = vmatprep.mubr.bf16.mxu1 %v2928_v24 }
 0x93e   :  { %v5825_v5 = vadd.f32 %v2913_v3, %v2487_v34  ;;  %v2922_v6 = vmax.f32 %v5821_v8, 0.0  ;;  %v4739_v34 = vld [vmem:[#allocation20 + $0x38] sm:$0xff]  }
 0x93f   :  { %4460 = vmatprep.subr.bf16.mxu0 %v4739_v34 }
 0x940   :  { %v2923_v63 = vmax.f32 %v5825_v5, 0.0  ;;  %v5831_v1 = vadd.f32 %v5825_v5, %v5784_v32  ;;  %4461 = vmatpush3.bf16.msra.mxu0 %v4739_v34  ;;  %v4742_v32 = vld [vmem:[#allocation13 + $0x10] sm:$0xff]  }
 0x941   :  { %4486 = vmatprep.subr.bf16.mxu0 %v4748_v52 }
 0x942   :  { %v2929_v31 = vpack.c.bf16 %v2923_v63, %v2922_v6 }
 0x944   :  { %4443 = vmatmul.mubr.bf16.vlgmr.msra.gmra.mrb[56].mxu1 %v2929_v31 }
 0x945   :  { %4467 = vmatpush3.bf16.msra.mxu1 %v4740_v10 }
 0x946   :  { %4468 = vmatprep.subr.bf16.mxu1 %v4741_v11 }
 0x949   :  { %4469 = vmatpush3.bf16.msra.mxu1 %v4741_v11 }
 0x94a   :  { %4470 = vmatprep.subr.bf16.mxu1 %v4742_v32 }
 0x94d   :  { %4471 = vmatpush3.bf16.msra.mxu1 %v4742_v32 }
 0x94e   :  { %4472 = vmatprep.subr.bf16.mxu1 %v4743_v12 }
 0x951   :  { %4473 = vmatpush3.bf16.msra.mxu1 %v4743_v12 }
 0x952   :  { %4474 = vmatprep.subr.bf16.mxu1 %v4744_v29 }
 0x955   :  { %4475 = vmatpush3.bf16.msra.mxu1 %v4744_v29 }
 0x956   :  { %4476 = vmatprep.subr.bf16.mxu1 %v4745_v40 }
 0x959   :  { %4477 = vmatpush3.bf16.msra.mxu1 %v4745_v40 }
 0x95a   :  { %4478 = vmatprep.subr.bf16.mxu1 %v4746_v38 }
 0x95d   :  { %4479 = vmatpush3.bf16.msra.mxu1 %v4746_v38  ;;  %v4759_v38 = vld [vmem:[%s5939_s7 + $0x18] sm:$0xff]  }
 0x95e   :  { %4480 = vmatprep.subr.bf16.mxu1 %v4747_v49 }
 0x961   :  { %4481 = vmatpush3.bf16.msra.mxu1 %v4747_v49  ;;  %v4760_v49 = vld [vmem:[%s5939_s7 + $0x20] sm:$0xff]  }
 0x962   :  { %4506 = vmatprep.subr.bf16.mxu1 %v5106_v59 }
 0xa17   :  { %v4444_v14 = vpop.f32.mrb[56].mxu1 }
 0xa18   :  { %v3051_v15 = vmul.f32 %v4444_v14, %v3919_v13  ;;  %v3028_v16 = vpop.f32.mrb[57].mxu1  ;;  %v3942_v14 = vld [vmem:[%s5975_s4 + $0x5] ss:$0 sm:$0xff] }
 0xa19   :  { %v3049_v17 = vmul.f32 %v3919_v13, %v3028_v16  ;;  %v4445_v18 = vpop.f32.mrb[58].mxu1 }
 0xa1a   :  { %v3061_v19 = vadd.f32 %v3920_v46, %v3051_v15  ;;  %v3052_v20 = vmul.f32 %v4445_v18, %v3919_v13  ;;  %v3031_v21 = vpop.f32.mrb[59].mxu1  ;;  %v3943_v15 = vld [vmem:[%s5976_s10 + $0x5] ss:$0 sm:$0xff] }
 0xa1b   :  { %v3059_v22 = vadd.f32 %v3920_v46, %v3049_v17  ;;  %v3050_v23 = vmul.f32 %v3919_v13, %v3031_v21  ;;  %v4757_v13 = vld [vmem:[%s5939_s7 + $0x8] sm:$0xff]  }
 0xa1c   :  { %v3062_v25 = vadd.f32 %v3920_v46, %v3052_v20  ;;  %v3065_v27 = vmax.f32 %v3061_v19, 0.0 }
 0xa1d   :  { %v3060_v26 = vadd.f32 %v3920_v46, %v3050_v23  ;;  %v3063_v33 = vmax.f32 %v3059_v22, 0.0  ;;  %v4758_v46 = vld [vmem:[%s5939_s7 + $0x10] sm:$0xff]  }
 0xa1e   :  { %v3066_v28 = vmax.f32 %v3062_v25, 0.0 }
 0xa1f   :  { %v3064_v36 = vmax.f32 %v3060_v26, 0.0 }
 0xa20   :  { %v3072_v43 = vpack.c.bf16 %v3066_v28, %v3065_v27 }
 0xa21   :  { %v3071_v2 = vpack.c.bf16 %v3064_v36, %v3063_v33 }
 0xa23   :  { %4462 = vmatprep.mubr.bf16.mxu0 %v3071_v2 }
 0xa24   :  { %4463 = vmatmul.mubr.bf16.vlgmr.msra.gmra.mrb[36].mxu0 %v3072_v43 }
 0xa25   :  { %4487 = vmatpush3.bf16.msra.mxu0 %v4748_v52  ;;  %v4761_v52 = vld [vmem:[%s5939_s7 + $0x28] sm:$0xff]  }
 0xa26   :  { %4488 = vmatprep.subr.bf16.mxu0 %v4749_v53 }
 0xa29   :  { %4489 = vmatpush3.bf16.msra.mxu0 %v4749_v53  ;;  %v4762_v53 = vld [vmem:[%s5939_s7 + $0x30] sm:$0xff]  }
 0xa2a   :  { %4490 = vmatprep.subr.bf16.mxu0 %v4750_v61 }
 0xa2d   :  { %4491 = vmatpush3.bf16.msra.mxu0 %v4750_v61  ;;  %v4763_v61 = vld [vmem:[%s5939_s7 + $0x38] sm:$0xff]  }
 0xa2e   :  { %4492 = vmatprep.subr.bf16.mxu0 %v4751_v45 }
 0xa31   :  { %4493 = vmatpush3.bf16.msra.mxu0 %v4751_v45 }
 0xa32   :  { %4494 = vmatprep.subr.bf16.mxu0 %v4752_v42 }
 0xa35   :  { %4495 = vmatpush3.bf16.msra.mxu0 %v4752_v42  ;;  %v3953_v42 = vld [vmem:[%s5977_s1 + $0x5] ss:$0 sm:$0xff] }
 0xaf7   :  { %v4464_v37 = vpop.f32.mrb[36].mxu0 }
 0xaf8   :  { %v3194_v9 = vmul.f32 %v4464_v37, %v3930_v4  ;;  %v3171_v50 = vpop.f32.mrb[37].mxu0 }
 0xaf9   :  { %v3192_v41 = vmul.f32 %v3930_v4, %v3171_v50  ;;  %v4465_v54 = vpop.f32.mrb[38].mxu0 }
 0xafa   :  { %v3204_v55 = vadd.f32 %v3931_v47, %v3194_v9  ;;  %v3195_v56 = vmul.f32 %v4465_v54, %v3930_v4  ;;  %v3174_v51 = vpop.f32.mrb[39].mxu0 }
 0xafb   :  { %v3202_v58 = vadd.f32 %v3931_v47, %v3192_v41  ;;  %v3193_v39 = vmul.f32 %v3930_v4, %v3174_v51 }
 0xafc   :  { %v3208_v0 = vmax.f32 %v3204_v55, 0.0  ;;  %v3205_v35 = vadd.f32 %v3931_v47, %v3195_v56 }
 0xafd   :  { %v3206_v24 = vmax.f32 %v3202_v58, 0.0  ;;  %v3203_v3 = vadd.f32 %v3931_v47, %v3193_v39  ;;  %v3954_v47 = vld [vmem:[#allocation2 + $0x5] ss:$0 sm:$0xff] }
 0xafe   :  { %v3209_v31 = vmax.f32 %v3205_v35, 0.0  ;;  %v3212_v34 = vadd.f32 %v3208_v0, %v2922_v6 }
 0xaff   :  { %v3210_v7 = vadd.f32 %v3206_v24, %v2920_v57  ;;  %v3207_v30 = vmax.f32 %v3203_v3, 0.0 }
 0xb00   :  { %v5853_v10 = vadd.f32 %v3209_v31, %v2923_v63  ;;  %v3218_v5 = vmax.f32 %v3212_v34, 0.0  ;;  %v4754_v63 = vld [vmem:[#allocation22 + $0x30] sm:$0xff]  }
 0xb01   :  { %v5857_v11 = vadd.f32 %v3207_v30, %v2921_v60  ;;  %v3216_v44 = vmax.f32 %v3210_v7, 0.0  ;;  %v4753_v60 = vld [vmem:[#allocation22 + $0x28] sm:$0xff]   ;;  %v3955_v7 = vld [vmem:[#allocation5] ss:$0 sm:$0xff] }
 0xb02   :  { %v5861_v32 = vadd.f32 %v5853_v10, %v5831_v1  ;;  %v3219_v12 = vmax.f32 %v5853_v10, 0.0  ;;  %4496 = vmatprep.subr.bf16.mxu0 %v4753_v60  ;;  %v4755_v1 = vld [vmem:[#allocation22 + $0x38] sm:$0xff]  }
 0xb03   :  { %v5866_v57 = vadd.f32 %v5857_v11, %v5814_v62  ;;  %v3217_v8 = vmax.f32 %v5857_v11, 0.0  ;;  %4497 = vmatpush3.bf16.msra.mxu0 %v4753_v60  ;;  %v4756_v62 = vld [vmem:[%s5939_s7] sm:$0xff]   ;;  %s5108_s7 = smov [#allocation23]  }
 0xb04   :  { %v3225_v48 = vpack.c.bf16 %v3219_v12, %v3218_v5  ;;  %4498 = vmatprep.subr.bf16.mxu0 %v4754_v63  ;;  %s3630_s1 = sshll.u32 %s5108_s7, 4  ;;  %s3631_s1 = int_to_ptr.vmem [resolvable:$true] %s3630_s1 }
 0xb05   :  { %v3224_v6 = vpack.c.bf16 %v3217_v8, %v3216_v44  ;;  %s5050_s30 = scalar_lea.vmem %s3631_s1, 32  ;;  %p5055_p7 = scmp.lt.s32.totalorder %s3631_s1, %s3631_s1 }
 0xb06   :  { %p5051_p6 = scmp.ne.s32.totalorder %s3631_s1, %s5050_s30  ;;  %p5056_p8 = scmp.lt.s32.totalorder %s5050_s30, %s5050_s30 }
 0xb07   :  { %4482 = vmatprep.mubr.bf16.mxu1 %v3224_v6  ;;  %4499 = vmatpush3.bf16.msra.mxu0 %v4754_v63 }
 0xb08   :  { %4483 = vmatmul.mubr.bf16.vlgmr.msra.gmra.mrb[60].mxu1 %v3225_v48  ;;  %4500 = vmatprep.subr.bf16.mxu0 %v4755_v1  ;;  %p5057_p9 = por %p5056_p8, %p5055_p7 }
 0xb09   :  { %4507 = vmatpush3.bf16.msra.mxu1 %v4756_v62  ;;  %4522 = vmatprep.mubr.msk.bf16.mxu1 %vm5107_vm2, %v5106_v59 }
 0xb0a   :  { %4508 = vmatprep.subr.bf16.mxu1 %v5106_v59  ;;  %p5058_p10 = pnand %p5057_p9, %p5051_p6 }
 0xb0b   :  { %4501 = vmatpush3.bf16.msra.mxu0 %v4755_v1 }
 0xb0d   :  { %4509 = vmatpush3.bf16.msra.mxu1 %v4757_v13 }
 0xb0e   :  { %4510 = vmatprep.subr.bf16.mxu1 %v5106_v59 }
 0xb11   :  { %4511 = vmatpush3.bf16.msra.mxu1 %v4758_v46 }
 0xb12   :  { %4512 = vmatprep.subr.bf16.mxu1 %v5106_v59 }
 0xb15   :  { %4513 = vmatpush3.bf16.msra.mxu1 %v4759_v38 }
 0xb16   :  { %4514 = vmatprep.subr.bf16.mxu1 %v5106_v59 }
 0xb19   :  { %4515 = vmatpush3.bf16.msra.mxu1 %v4760_v49 }
 0xb1a   :  { %4516 = vmatprep.subr.bf16.mxu1 %v5106_v59 }
 0xb1d   :  { %4517 = vmatpush3.bf16.msra.mxu1 %v4761_v52 }
 0xb1e   :  { %4518 = vmatprep.subr.bf16.mxu1 %v5106_v59 }
 0xb21   :  { %4519 = vmatpush3.bf16.msra.mxu1 %v4762_v53 }
 0xb22   :  { %4520 = vmatprep.subr.bf16.mxu1 %v5106_v59 }
 0xb25   :  { %4521 = vmatpush3.bf16.msra.mxu1 %v4763_v61 }
 0xbdb   :  { %v4484_v16 = vpop.f32.mrb[60].mxu1 }
 0xbdc   :  { %v3347_v17 = vmul.f32 %v4484_v16, %v3942_v14  ;;  %v3324_v18 = vpop.f32.mrb[61].mxu1 }
 0xbdd   :  { %v3345_v19 = vmul.f32 %v3942_v14, %v3324_v18  ;;  %v4485_v20 = vpop.f32.mrb[62].mxu1 }
 0xbde   :  { %v3357_v21 = vadd.f32 %v3943_v15, %v3347_v17  ;;  %v3348_v22 = vmul.f32 %v4485_v20, %v3942_v14  ;;  %v3327_v23 = vpop.f32.mrb[63].mxu1 }
 0xbdf   :  { %v3355_v25 = vadd.f32 %v3943_v15, %v3345_v19  ;;  %v3346_v26 = vmul.f32 %v3942_v14, %v3327_v23 }
 0xbe0   :  { %v3358_v27 = vadd.f32 %v3943_v15, %v3348_v22  ;;  %v3361_v33 = vmax.f32 %v3357_v21, 0.0 }
 0xbe1   :  { %v3356_v28 = vadd.f32 %v3943_v15, %v3346_v26  ;;  %v3359_v43 = vmax.f32 %v3355_v25, 0.0 }
 0xbe2   :  { %v3362_v36 = vmax.f32 %v3358_v27, 0.0 }
 0xbe3   :  { %v3360_v2 = vmax.f32 %v3356_v28, 0.0 }
 0xbe4   :  { %v3368_v29 = vpack.c.bf16 %v3362_v36, %v3361_v33 }
 0xbe5   :  { %v3367_v40 = vpack.c.bf16 %v3360_v2, %v3359_v43 }
 0xbe7   :  { %4502 = vmatprep.mubr.bf16.mxu0 %v3367_v40 }
 0xbe8   :  { %4503 = vmatmul.mubr.bf16.vlgmr.msra.gmra.mrb[40].mxu0 %v3368_v29 }
 0xcbb   :  { %v4504_v45 = vpop.f32.mrb[40].mxu0 }
 0xcbc   :  { %v3467_v4 = vpop.f32.mrb[41].mxu0 }
 0xcbd   :  { %v4505_v37 = vpop.f32.mrb[42].mxu0 }
 0xcbe   :  { %v3487_v9 = vmul.f32 %v4505_v37, %v3953_v42  ;;  %v3469_v50 = vpop.f32.mrb[43].mxu0 }
 0xcbf   :  { %v3486_v41 = vmul.f32 %v3953_v42, %v3469_v50 }
 0xcc0   :  { %v3495_v54 = vadd.f32 %v3954_v47, %v3487_v9 }
 0xcc1   :  { %v3494_v55 = vadd.f32 %v3954_v47, %v3486_v41 }
 0xcc2   :  { %v3497_v56 = vmax.f32 %v3495_v54, 0.0 }
 0xcc3   :  { %v3496_v51 = vmax.f32 %v3494_v55, 0.0 }
 0xcc4   :  { %v3499_v58 = vadd.f32 %v3497_v56, %v3219_v12 }
 0xcc5   :  { %v3498_v59 = vadd.f32 %v3496_v51, %v3217_v8 }
 0xcc6   :  { %v3501_v39 = vadd.f32 %v3499_v58, %v5861_v32 }
 0xcc7   :  { %v3500_v0 = vadd.f32 %v3498_v59, %v5866_v57 }
 0xcc8   :  { %v3506_v35 = vrot.slane %v3501_v39, 6 }
 0xcc9   :  { %v3503_v24 = vrot.slane %v3500_v0, 7 }
 0xccb   :  { %v3509_v3 = vsel %vm3508_vm3, %v3503_v24, %v3506_v35 }
 0xccc   :  { %v3510_v31 = vpack.c.bf16 %v3509_v3, %v3509_v3 }
 0xcce   :  { %4523 = vmatmul.mubr.bf16.vlgmr.msra.gmra.mrb[64].mxu1 %v3510_v31 }
 0xda1   :  { %v3616_v30 = vpop.f32.mrb[64].mxu1 }
 0xda2   :  { %v3617_v34 = vadd.f32 %v3955_v7, %v3616_v30  ;;  %v4524_v10 = vpop.f32.mrb[65].mxu1 }
 0xda3   :  { %v3619_v11 = vpop.f32.mrb[66].mxu1 }
 0xda4   :  { %v4525_v12 = vpop.f32.mrb[67].mxu1  ;;  %3623 = vst.msk [vmem:[#allocation23] sm:$0x3] %vm3622_vm4, %v3617_v34 }
 0xda5   :  { %5061 = shalt.err (!%p5058_p10)
}
 0xda6   :  { %s5062_s18 = scalar_lea.hbm %s5953_s21, 32 }
 0xda7   :  { %p5063_p11 = scmp.ne.s32.totalorder %s5953_s21, %s5062_s18  ;;  %p5066_p12 = scmp.lt.u32.totalorder %s5062_s18, %s5953_s21 }
 0xda9   :  { %p5068_p13 = pnand %p5066_p12, %p5063_p11 }
 0xdab   :  { %5071 = shalt.err (!%p5068_p13)
}
 0xdac   :  { %3633 = dma.vmem_to_hbm [thread:$0]  %s3631_s1, 32, %s5953_s21, [#allocation4]  }
 0xdad   :  { %5086 = dma.done.wait [#allocation4], 32  }
 0xdae   :  { %5087 = vsyncadd [#allocation4], 4294967264 }
 0xdaf   :  { %3637 = vsyncpa [#allocation3], 1 }
 0xdb0   :  { %3638 = vsyncpa [#allocation6], 1 }
 0xdb1   :  { %3639 = vsyncpa [#allocation9], 1 }
 0xdb2   :  { %3640 = vsyncpa [#allocation12], 1 }
 0xdb3   :  { %3641 = vsyncpa [#allocation15], 1 }
 0xdb4   :  { %3642 = vsyncpa [#allocation18], 1 }
 0xdb5   :  { %3643 = vsyncpa [#allocation21], 1 }
 0xdb6   :  { %3644 = vsyncpa [#allocation4], 1 }

</bundles_post_ra>
